<compile_context>
chip_gen: v7x
topology: tpu7x:2x2x1
jax: 0.10.0
libtpu: 0.0.40
codegen_flags: <defaults>
</compile_context>

<pallas_src>
import jax
import jax.numpy as jnp
from jax.experimental import pallas as pl
from jax.experimental.pallas import tpu as pltpu


# ----------------------------------------------------------------------------
# Fused kernel: all RNN layers + FC head for one batch block.
# ----------------------------------------------------------------------------
def _fused_rnn_fc_kernel(x_ref, wih0_ref, wihr_ref, whh_ref, b_ref,
                         fcw_ref, fcb_ref, o_ref, act_ref):
    """Shapes (all padded):
      x_ref    : (T, BB, P_in)   bf16  time-major inputs for this batch block
      wih0_ref : (P_in, P_h)     bf16  layer-0 input->hidden weight (transposed)
      wihr_ref : (max(L-1,1), P_h, P_h) bf16  layers>=1 input->hidden weights
                                        (dummy, unread, when L == 1)
      whh_ref  : (L, P_h, P_h)   bf16  hidden->hidden weights (transposed)
      b_ref    : (L, 1, P_h)     f32   b_ih + b_hh per layer
      fcw_ref  : (P_h, Cp)       bf16  final Linear weight (transposed)
      fcb_ref  : (1, Cp)         f32   final Linear bias
      o_ref    : (BB, Cp)        f32   logits for this batch block
      act_ref  : (T, BB, P_h)    f32   VMEM scratch: per-layer activations
    """
    T, BB, P = act_ref.shape
    L = whh_ref.shape[0]
    TS = min(T, 8)                       # time slab for the hoisted projection
    unroll = True if T <= 32 else 8      # partial unroll for long sequences

    h_last = None
    for layer in range(L):               # static unroll over layers
        # (1) Input projection hoisted out of the recurrence, chunked over time
        #     so only one slab's temporaries are live at a time.
        for t0 in range(0, T, TS):
            ts = min(TS, T - t0)
            if layer == 0:
                src = x_ref[pl.ds(t0, ts)]                       # bf16 already
                w = wih0_ref[...]
            else:
                src = act_ref[pl.ds(t0, ts)].astype(jnp.bfloat16)
                w = wihr_ref[layer - 1]
            rows = ts * BB
            proj = (
                jnp.dot(src.reshape(rows, src.shape[2]), w,
                        preferred_element_type=jnp.float32)
                + b_ref[layer]
            )
            act_ref[pl.ds(t0, ts)] = proj.reshape(ts, BB, P)

        # (2) Sequential recurrence: only h @ W_hh + tanh on the critical path.
        is_last = layer == L - 1

        def step(t, h, _layer=layer, _is_last=is_last):
            h_new = jnp.tanh(
                act_ref[t]
                + jnp.dot(h.astype(jnp.bfloat16), whh_ref[_layer],
                          preferred_element_type=jnp.float32)
            )
            if not _is_last:
                # Overwrite this timestep's projection with the layer output;
                # slot t is read exactly once (this step) before the write.
                act_ref[t] = h_new
            return h_new

        h_last = jax.lax.fori_loop(
            0, T, step, jnp.zeros((BB, P), jnp.float32), unroll=unroll
        )

    # (3) Final Linear fused in: logits = h_T @ W_fc + b_fc (lane-dense store).
    o_ref[...] = (
        jnp.dot(h_last.astype(jnp.bfloat16), fcw_ref[...],
                preferred_element_type=jnp.float32)
        + fcb_ref[...]
    ).astype(o_ref.dtype)


# ----------------------------------------------------------------------------
# Wrapper: padding to (8, 128) tiles + pallas_call plumbing.
# ----------------------------------------------------------------------------
def _round_up(x, m):
    return ((x + m - 1) // m) * m


def _num_tensorcores():
    """1 on v5e/v6e (single TC/chip), 2 on v7x.  Conservative fallback: 1."""
    try:
        kind = jax.devices()[0].device_kind.lower()
    except Exception:
        return 1
    return 2 if ("v7" in kind or "7x" in kind) else 1


def _vmem_capacity_bytes():
    try:
        return int(pltpu.get_tpu_info().vmem_capacity_bytes)
    except Exception:
        return 64 * 1024 * 1024          # conservative (v7x per-TC)


def fused_rnn_forward(x_btd, layer_wih, layer_whh, layer_b, fc_w, fc_b):
    """x_btd: (B, T, D_in) batch-first, like the PyTorch module.
    Weights are stored pre-transposed vs. the PyTorch state_dict:
    w_ih (D_l, H), w_hh (H, H), fc_w (H, C).  Returns (B, C) f32 logits."""
    B, T, D_in = x_btd.shape
    H = layer_whh[0].shape[0]
    C = fc_w.shape[1]
    L = len(layer_wih)

    # Hardware-tile padding: batch -> multiple of 8 sublanes, features -> 128
    # lanes.  Layer-0 input keeps its own padded width; zero padding is exact.
    P_in = _round_up(D_in, 128)
    P_h = _round_up(H, 128)
    Cp = _round_up(C, 128)
    Bp = _round_up(B, 8)

    # Batch block: split across TensorCores only when the chip actually has
    # more than one (v7x) AND each block still has >= 64 padded rows; on
    # single-TC chips a split would just serialize the recurrence twice.
    n_tc = _num_tensorcores()
    BB = Bp
    if n_tc >= 2 and Bp % (8 * n_tc) == 0 and (Bp // n_tc) >= 64:
        BB = Bp // n_tc
    grid = (Bp // BB,)

    # --- pad / cast inputs & params (cheap XLA ops outside the kernel) ---
    # bf16 matmul operands (MXU-native); biases stay f32.
    x_tbp = jnp.transpose(x_btd, (1, 0, 2)).astype(jnp.bfloat16)     # (T,B,D)
    x_tbp = jnp.pad(x_tbp, ((0, 0), (0, Bp - B), (0, P_in - D_in)))  # (T,Bp,Pin)

    wih0 = jnp.pad(layer_wih[0].astype(jnp.bfloat16),
                   ((0, P_in - D_in), (0, P_h - H)))                 # (Pin,Ph)
    if L > 1:
        wihr = jnp.stack([
            jnp.pad(w.astype(jnp.bfloat16), ((0, P_h - H), (0, P_h - H)))
            for w in layer_wih[1:]
        ])                                                           # (L-1,Ph,Ph)
    else:
        wihr = jnp.zeros((1, P_h, P_h), jnp.bfloat16)                # dummy, unread
    whh = jnp.stack([
        jnp.pad(w.astype(jnp.bfloat16), ((0, P_h - H), (0, P_h - H)))
        for w in layer_whh
    ])                                                               # (L,Ph,Ph)
    b = jnp.stack([
        jnp.pad(bb.astype(jnp.float32).reshape(1, H), ((0, 0), (0, P_h - H)))
        for bb in layer_b
    ])                                                               # (L,1,Ph)
    fcw = jnp.pad(fc_w.astype(jnp.bfloat16), ((0, P_h - H), (0, Cp - C)))
    fcb = jnp.pad(fc_b.astype(jnp.float32).reshape(1, C),
                  ((0, 0), (0, Cp - C)))                             # (1,Cp)

    Lr = max(L - 1, 1)

    # --- VMEM budget derived from actual block footprint (x2 = double buffer) ---
    bf2, f4 = 2, 4
    needed = (
        2 * T * BB * P_in * bf2            # x block (double-buffered)
        + 2 * P_in * P_h * bf2             # wih0
        + 2 * Lr * P_h * P_h * bf2         # wih rest
        + 2 * L * P_h * P_h * bf2          # whh
        + 2 * L * P_h * f4                 # biases
        + 2 * P_h * Cp * bf2               # fc weight
        + 2 * Cp * f4                      # fc bias
        + 2 * BB * Cp * f4                 # output block
        + T * BB * P_h * f4                # act scratch (single)
        + 4 * min(T, 8) * BB * P_h * f4    # projection slab temporaries headroom
    )
    phys = _vmem_capacity_bytes()
    cap = max(32 * 1024 * 1024, phys - 16 * 1024 * 1024)  # ~48 MiB v7x, ~112 MiB v5e/v6e
    vmem_limit = int(min(max(2 * needed, 32 * 1024 * 1024), cap))

    out_padded = pl.pallas_call(
        _fused_rnn_fc_kernel,
        out_shape=jax.ShapeDtypeStruct((Bp, Cp), jnp.float32),
        grid=grid,
        in_specs=[
            pl.BlockSpec((T, BB, P_in), lambda i: (0, i, 0)),   # x (time-major)
            pl.BlockSpec((P_in, P_h), lambda i: (0, 0)),        # W_ih layer 0
            pl.BlockSpec((Lr, P_h, P_h), lambda i: (0, 0, 0)),  # W_ih layers>=1
            pl.BlockSpec((L, P_h, P_h), lambda i: (0, 0, 0)),   # W_hh (all layers)
            pl.BlockSpec((L, 1, P_h), lambda i: (0, 0, 0)),     # biases
            pl.BlockSpec((P_h, Cp), lambda i: (0, 0)),          # fc weight
            pl.BlockSpec((1, Cp), lambda i: (0, 0)),            # fc bias
        ],
        out_specs=pl.BlockSpec((BB, Cp), lambda i: (i, 0)),
        scratch_shapes=[pltpu.VMEM((T, BB, P_h), jnp.float32)],
        compiler_params=pltpu.CompilerParams(
            dimension_semantics=("parallel",),   # batch blocks are independent
            vmem_limit_bytes=vmem_limit,
        ),
    )(x_tbp, wih0, wihr, whh, b, fcw, fcb)

    return out_padded[:B, :C]


# ----------------------------------------------------------------------------
# Parameter init mirroring nn.RNN / nn.Linear (uniform(-1/sqrt(H), 1/sqrt(H))).
# NOTE: weights here are stored pre-transposed vs. PyTorch's state_dict
# (weight_ih_l{k} is (H, D_in) there); transpose before reuse.
# ----------------------------------------------------------------------------
def init_params(key, hidden_dim, input_dim, num_layers, num_classes):
    params = {"layers": []}
    bound = 1.0 / float(hidden_dim) ** 0.5
    for layer in range(num_layers):
        d_in = input_dim if layer == 0 else hidden_dim
        key, k1, k2, k3, k4 = jax.random.split(key, 5)
        w_ih = jax.random.uniform(k1, (d_in, hidden_dim), jnp.float32, -bound, bound)
        w_hh = jax.random.uniform(k2, (hidden_dim, hidden_dim), jnp.float32, -bound, bound)
        b_ih = jax.random.uniform(k3, (hidden_dim,), jnp.float32, -bound, bound)
        b_hh = jax.random.uniform(k4, (hidden_dim,), jnp.float32, -bound, bound)
        params["layers"].append({"w_ih": w_ih, "w_hh": w_hh, "b": b_ih + b_hh})
    key, k5, k6 = jax.random.split(key, 3)
    params["fc_w"] = jax.random.uniform(
        k5, (hidden_dim, num_classes), jnp.float32, -bound, bound)
    params["fc_b"] = jax.random.uniform(
        k6, (num_classes,), jnp.float32, -bound, bound)
    return params


@jax.jit
def simple_rnn_model(params, x_btd):
    """Forward pass matching SimpleRNNModel.forward: x (B, T, D_in) -> (B, C)."""
    return fused_rnn_forward(
        x_btd,
        [lp["w_ih"] for lp in params["layers"]],
        [lp["w_hh"] for lp in params["layers"]],
        [lp["b"] for lp in params["layers"]],
        params["fc_w"],
        params["fc_b"],
    )


# ----------------------------------------------------------------------------
# Pure-JAX references.  `emulate_bf16=True` rounds matmul inputs to bf16 just
# like the kernel does, for a tight numerical check; the f32 reference checks
# semantics against the original module with a looser tolerance.
# ----------------------------------------------------------------------------
def reference(params, x_btd, emulate_bf16=False):
    if emulate_bf16:
        cast = lambda a: a.astype(jnp.bfloat16).astype(jnp.float32)
    else:
        cast = lambda a: a
    h_seq = x_btd.astype(jnp.float32)
    B = x_btd.shape[0]
    for lp in params["layers"]:
        H = lp["w_hh"].shape[0]
        h = jnp.zeros((B, H), jnp.float32)
        outs = []
        for t in range(h_seq.shape[1]):
            h = jnp.tanh(cast(h_seq[:, t, :]) @ cast(lp["w_ih"])
                         + cast(h) @ cast(lp["w_hh"]) + lp["b"])
            outs.append(h)
        h_seq = jnp.stack(outs, axis=1)
    return cast(h_seq[:, -1, :]) @ cast(params["fc_w"]) + params["fc_b"]


if __name__ == "__main__":
    # Small shapes consistent with the module's forward: x is (B, T, input_dim).
    B, T = 2, 8
    input_dim, hidden_dim, num_layers, num_classes = 16, 32, 2, 10

    key = jax.random.PRNGKey(0)
    key, pkey, xkey = jax.random.split(key, 3)
    params = init_params(pkey, hidden_dim, input_dim, num_layers, num_classes)
    x = jax.random.normal(xkey, (B, T, input_dim), jnp.float32)

    out = simple_rnn_model(params, x)
    out = jax.block_until_ready(out)
    assert out.shape == (B, num_classes)

    # Tight check vs a bf16-emulating reference (same rounding points as kernel).
    ref_bf = reference(params, x, emulate_bf16=True)
    diff_bf = jnp.max(jnp.abs(out - ref_bf))
    assert jnp.allclose(out, ref_bf, atol=5e-3, rtol=5e-3), (
        f"bf16-emulated mismatch: max abs diff {diff_bf}")

    # Looser sanity check vs the full-f32 reference (bf16 matmuls in the kernel).
    ref_f32 = reference(params, x, emulate_bf16=False)
    diff_f32 = jnp.max(jnp.abs(out - ref_f32))
    assert jnp.allclose(out, ref_f32, atol=6e-2, rtol=6e-2), (
        f"f32 reference mismatch: max abs diff {diff_f32}")

    print("KERNEL_OK")
</pallas_src>

<mosaic_0001>
module attributes {stable_mosaic.version = 11 : i64} {
  func.func @_fused_rnn_fc_kernel(%arg0: i32, %arg1: memref<8x8x128xbf16, #tpu.memory_space<vmem>>, %arg2: memref<128x128xbf16, #tpu.memory_space<vmem>>, %arg3: memref<1x128x128xbf16, #tpu.memory_space<vmem>>, %arg4: memref<2x128x128xbf16, #tpu.memory_space<vmem>>, %arg5: memref<2x1x128xf32, #tpu.memory_space<vmem>>, %arg6: memref<128x128xbf16, #tpu.memory_space<vmem>>, %arg7: memref<1x128xf32, #tpu.memory_space<vmem>>, %arg8: memref<8x128xf32, #tpu.memory_space<vmem>>, %arg9: memref<8x8x128xf32, #tpu.memory_space<vmem>>) attributes {dimension_semantics = [#tpu.dimension_semantics<parallel>], iteration_bounds = array<i64: 1>, scalar_prefetch = 0 : i64, scratch_operands = 1 : i64, tpu.core_type = #tpu.core_type<tc>, window_params = [{transform_indices = @transform_0, window_bounds = array<i64: 8, 8, 128>}, {pipeline_mode = #tpu.pipeline_mode<synchronous>, transform_indices = @transform_1, window_bounds = array<i64: 128, 128>}, {pipeline_mode = #tpu.pipeline_mode<synchronous>, transform_indices = @transform_2, window_bounds = array<i64: 1, 128, 128>}, {pipeline_mode = #tpu.pipeline_mode<synchronous>, transform_indices = @transform_3, window_bounds = array<i64: 2, 128, 128>}, {pipeline_mode = #tpu.pipeline_mode<synchronous>, transform_indices = @transform_4, window_bounds = array<i64: 2, 1, 128>}, {pipeline_mode = #tpu.pipeline_mode<synchronous>, transform_indices = @transform_5, window_bounds = array<i64: 128, 128>}, {pipeline_mode = #tpu.pipeline_mode<synchronous>, transform_indices = @transform_6, window_bounds = array<i64: 1, 128>}, {transform_indices = @transform_7, window_bounds = array<i64: 8, 128>}]} {
    %c0 = arith.constant 0 : index
    %c0_0 = arith.constant 0 : index
    %c0_1 = arith.constant 0 : index
    %0 = vector.load %arg1[%c0, %c0_0, %c0_1] : memref<8x8x128xbf16, #tpu.memory_space<vmem>>, vector<8x8x128xbf16>
    %c0_2 = arith.constant 0 : index
    %c0_3 = arith.constant 0 : index
    %1 = vector.load %arg2[%c0_2, %c0_3] : memref<128x128xbf16, #tpu.memory_space<vmem>>, vector<128x128xbf16>
    %2 = vector.shape_cast %0 : vector<8x8x128xbf16> to vector<64x128xbf16>
    %cst = arith.constant dense<0.000000e+00> : vector<64x128xf32>
    %3 = tpu.matmul %2, %1, %cst {dimension_numbers = #tpu.dot_dimension_numbers<[1], [0], [0], [1], [0, 0, 1, 1], [], []>} : vector<64x128xbf16>, vector<128x128xbf16>, vector<64x128xf32> -> vector<64x128xf32>
    %c0_4 = arith.constant 0 : index
    %c0_5 = arith.constant 0 : index
    %c0_6 = arith.constant 0 : index
    %4 = vector.load %arg5[%c0_4, %c0_5, %c0_6] : memref<2x1x128xf32, #tpu.memory_space<vmem>>, vector<1x1x128xf32>
    %5 = vector.shape_cast %4 : vector<1x1x128xf32> to vector<1x128xf32>
    %6 = vector.broadcast %5 : vector<1x128xf32> to vector<64x128xf32>
    %7 = arith.addf %3, %6 : vector<64x128xf32>
    %8 = vector.shape_cast %7 : vector<64x128xf32> to vector<8x8x128xf32>
    %c0_7 = arith.constant 0 : index
    %c0_8 = arith.constant 0 : index
    %c0_9 = arith.constant 0 : index
    %9 = vector.load %arg9[%c0_7, %c0_8, %c0_9] : memref<8x8x128xf32, #tpu.memory_space<vmem>>, vector<8x8x128xf32>
    tpu.vector_store %arg9[%c0_7, %c0_8, %c0_9], %8 {strides = array<i32>} : memref<8x8x128xf32, #tpu.memory_space<vmem>>, vector<8x8x128xf32>,
    %cst_10 = arith.constant 0.000000e+00 : f32
    %10 = vector.broadcast %cst_10 : f32 to vector<8x128xf32>
    %c0_i32 = arith.constant 0 : i32
    %11 = arith.index_cast %c0_i32 : i32 to index
    %c0_11 = arith.constant 0 : index
    %c0_12 = arith.constant 0 : index
    %12 = vector.load %arg9[%11, %c0_11, %c0_12] : memref<8x8x128xf32, #tpu.memory_space<vmem>>, vector<1x8x128xf32>
    %13 = vector.shape_cast %12 : vector<1x8x128xf32> to vector<8x128xf32>
    %14 = arith.truncf %10 : vector<8x128xf32> to vector<8x128xbf16>
    %c0_13 = arith.constant 0 : index
    %c0_14 = arith.constant 0 : index
    %c0_15 = arith.constant 0 : index
    %15 = vector.load %arg4[%c0_13, %c0_14, %c0_15] : memref<2x128x128xbf16, #tpu.memory_space<vmem>>, vector<1x128x128xbf16>
    %16 = vector.shape_cast %15 : vector<1x128x128xbf16> to vector<128x128xbf16>
    %cst_16 = arith.constant dense<0.000000e+00> : vector<8x128xf32>
    %17 = tpu.matmul %14, %16, %cst_16 {dimension_numbers = #tpu.dot_dimension_numbers<[1], [0], [0], [1], [0, 0, 1, 1], [], []>} : vector<8x128xbf16>, vector<128x128xbf16>, vector<8x128xf32> -> vector<8x128xf32>
    %18 = arith.addf %13, %17 : vector<8x128xf32>
    %19 = math.tanh %18 : vector<8x128xf32>
    %20 = arith.index_cast %c0_i32 : i32 to index
    %c0_17 = arith.constant 0 : index
    %c0_18 = arith.constant 0 : index
    %21 = vector.load %arg9[%20, %c0_17, %c0_18] : memref<8x8x128xf32, #tpu.memory_space<vmem>>, vector<1x8x128xf32>
    %22 = vector.shape_cast %21 : vector<1x8x128xf32> to vector<8x128xf32>
    %23 = vector.shape_cast %19 : vector<8x128xf32> to vector<1x8x128xf32>
    tpu.vector_store %arg9[%20, %c0_17, %c0_18], %23 {strides = array<i32>} : memref<8x8x128xf32, #tpu.memory_space<vmem>>, vector<1x8x128xf32>,
    %c1_i32 = arith.constant 1 : i32
    %24 = arith.index_cast %c1_i32 : i32 to index
    %c0_19 = arith.constant 0 : index
    %c0_20 = arith.constant 0 : index
    %25 = vector.load %arg9[%24, %c0_19, %c0_20] : memref<8x8x128xf32, #tpu.memory_space<vmem>>, vector<1x8x128xf32>
    %26 = vector.shape_cast %25 : vector<1x8x128xf32> to vector<8x128xf32>
    %27 = arith.truncf %19 : vector<8x128xf32> to vector<8x128xbf16>
    %c0_21 = arith.constant 0 : index
    %c0_22 = arith.constant 0 : index
    %c0_23 = arith.constant 0 : index
    %28 = vector.load %arg4[%c0_21, %c0_22, %c0_23] : memref<2x128x128xbf16, #tpu.memory_space<vmem>>, vector<1x128x128xbf16>
    %29 = vector.shape_cast %28 : vector<1x128x128xbf16> to vector<128x128xbf16>
    %cst_24 = arith.constant dense<0.000000e+00> : vector<8x128xf32>
    %30 = tpu.matmul %27, %29, %cst_24 {dimension_numbers = #tpu.dot_dimension_numbers<[1], [0], [0], [1], [0, 0, 1, 1], [], []>} : vector<8x128xbf16>, vector<128x128xbf16>, vector<8x128xf32> -> vector<8x128xf32>
    %31 = arith.addf %26, %30 : vector<8x128xf32>
    %32 = math.tanh %31 : vector<8x128xf32>
    %33 = arith.index_cast %c1_i32 : i32 to index
    %c0_25 = arith.constant 0 : index
    %c0_26 = arith.constant 0 : index
    %34 = vector.load %arg9[%33, %c0_25, %c0_26] : memref<8x8x128xf32, #tpu.memory_space<vmem>>, vector<1x8x128xf32>
    %35 = vector.shape_cast %34 : vector<1x8x128xf32> to vector<8x128xf32>
    %36 = vector.shape_cast %32 : vector<8x128xf32> to vector<1x8x128xf32>
    tpu.vector_store %arg9[%33, %c0_25, %c0_26], %36 {strides = array<i32>} : memref<8x8x128xf32, #tpu.memory_space<vmem>>, vector<1x8x128xf32>,
    %c2_i32 = arith.constant 2 : i32
    %37 = arith.index_cast %c2_i32 : i32 to index
    %c0_27 = arith.constant 0 : index
    %c0_28 = arith.constant 0 : index
    %38 = vector.load %arg9[%37, %c0_27, %c0_28] : memref<8x8x128xf32, #tpu.memory_space<vmem>>, vector<1x8x128xf32>
    %39 = vector.shape_cast %38 : vector<1x8x128xf32> to vector<8x128xf32>
    %40 = arith.truncf %32 : vector<8x128xf32> to vector<8x128xbf16>
    %c0_29 = arith.constant 0 : index
    %c0_30 = arith.constant 0 : index
    %c0_31 = arith.constant 0 : index
    %41 = vector.load %arg4[%c0_29, %c0_30, %c0_31] : memref<2x128x128xbf16, #tpu.memory_space<vmem>>, vector<1x128x128xbf16>
    %42 = vector.shape_cast %41 : vector<1x128x128xbf16> to vector<128x128xbf16>
    %cst_32 = arith.constant dense<0.000000e+00> : vector<8x128xf32>
    %43 = tpu.matmul %40, %42, %cst_32 {dimension_numbers = #tpu.dot_dimension_numbers<[1], [0], [0], [1], [0, 0, 1, 1], [], []>} : vector<8x128xbf16>, vector<128x128xbf16>, vector<8x128xf32> -> vector<8x128xf32>
    %44 = arith.addf %39, %43 : vector<8x128xf32>
    %45 = math.tanh %44 : vector<8x128xf32>
    %46 = arith.index_cast %c2_i32 : i32 to index
    %c0_33 = arith.constant 0 : index
    %c0_34 = arith.constant 0 : index
    %47 = vector.load %arg9[%46, %c0_33, %c0_34] : memref<8x8x128xf32, #tpu.memory_space<vmem>>, vector<1x8x128xf32>
    %48 = vector.shape_cast %47 : vector<1x8x128xf32> to vector<8x128xf32>
    %49 = vector.shape_cast %45 : vector<8x128xf32> to vector<1x8x128xf32>
    tpu.vector_store %arg9[%46, %c0_33, %c0_34], %49 {strides = array<i32>} : memref<8x8x128xf32, #tpu.memory_space<vmem>>, vector<1x8x128xf32>,
    %c3_i32 = arith.constant 3 : i32
    %50 = arith.index_cast %c3_i32 : i32 to index
    %c0_35 = arith.constant 0 : index
    %c0_36 = arith.constant 0 : index
    %51 = vector.load %arg9[%50, %c0_35, %c0_36] : memref<8x8x128xf32, #tpu.memory_space<vmem>>, vector<1x8x128xf32>
    %52 = vector.shape_cast %51 : vector<1x8x128xf32> to vector<8x128xf32>
    %53 = arith.truncf %45 : vector<8x128xf32> to vector<8x128xbf16>
    %c0_37 = arith.constant 0 : index
    %c0_38 = arith.constant 0 : index
    %c0_39 = arith.constant 0 : index
    %54 = vector.load %arg4[%c0_37, %c0_38, %c0_39] : memref<2x128x128xbf16, #tpu.memory_space<vmem>>, vector<1x128x128xbf16>
    %55 = vector.shape_cast %54 : vector<1x128x128xbf16> to vector<128x128xbf16>
    %cst_40 = arith.constant dense<0.000000e+00> : vector<8x128xf32>
    %56 = tpu.matmul %53, %55, %cst_40 {dimension_numbers = #tpu.dot_dimension_numbers<[1], [0], [0], [1], [0, 0, 1, 1], [], []>} : vector<8x128xbf16>, vector<128x128xbf16>, vector<8x128xf32> -> vector<8x128xf32>
    %57 = arith.addf %52, %56 : vector<8x128xf32>
    %58 = math.tanh %57 : vector<8x128xf32>
    %59 = arith.index_cast %c3_i32 : i32 to index
    %c0_41 = arith.constant 0 : index
    %c0_42 = arith.constant 0 : index
    %60 = vector.load %arg9[%59, %c0_41, %c0_42] : memref<8x8x128xf32, #tpu.memory_space<vmem>>, vector<1x8x128xf32>
    %61 = vector.shape_cast %60 : vector<1x8x128xf32> to vector<8x128xf32>
    %62 = vector.shape_cast %58 : vector<8x128xf32> to vector<1x8x128xf32>
    tpu.vector_store %arg9[%59, %c0_41, %c0_42], %62 {strides = array<i32>} : memref<8x8x128xf32, #tpu.memory_space<vmem>>, vector<1x8x128xf32>,
    %c4_i32 = arith.constant 4 : i32
    %63 = arith.index_cast %c4_i32 : i32 to index
    %c0_43 = arith.constant 0 : index
    %c0_44 = arith.constant 0 : index
    %64 = vector.load %arg9[%63, %c0_43, %c0_44] : memref<8x8x128xf32, #tpu.memory_space<vmem>>, vector<1x8x128xf32>
    %65 = vector.shape_cast %64 : vector<1x8x128xf32> to vector<8x128xf32>
    %66 = arith.truncf %58 : vector<8x128xf32> to vector<8x128xbf16>
    %c0_45 = arith.constant 0 : index
    %c0_46 = arith.constant 0 : index
    %c0_47 = arith.constant 0 : index
    %67 = vector.load %arg4[%c0_45, %c0_46, %c0_47] : memref<2x128x128xbf16, #tpu.memory_space<vmem>>, vector<1x128x128xbf16>
    %68 = vector.shape_cast %67 : vector<1x128x128xbf16> to vector<128x128xbf16>
    %cst_48 = arith.constant dense<0.000000e+00> : vector<8x128xf32>
    %69 = tpu.matmul %66, %68, %cst_48 {dimension_numbers = #tpu.dot_dimension_numbers<[1], [0], [0], [1], [0, 0, 1, 1], [], []>} : vector<8x128xbf16>, vector<128x128xbf16>, vector<8x128xf32> -> vector<8x128xf32>
    %70 = arith.addf %65, %69 : vector<8x128xf32>
    %71 = math.tanh %70 : vector<8x128xf32>
    %72 = arith.index_cast %c4_i32 : i32 to index
    %c0_49 = arith.constant 0 : index
    %c0_50 = arith.constant 0 : index
    %73 = vector.load %arg9[%72, %c0_49, %c0_50] : memref<8x8x128xf32, #tpu.memory_space<vmem>>, vector<1x8x128xf32>
    %74 = vector.shape_cast %73 : vector<1x8x128xf32> to vector<8x128xf32>
    %75 = vector.shape_cast %71 : vector<8x128xf32> to vector<1x8x128xf32>
    tpu.vector_store %arg9[%72, %c0_49, %c0_50], %75 {strides = array<i32>} : memref<8x8x128xf32, #tpu.memory_space<vmem>>, vector<1x8x128xf32>,
    %c5_i32 = arith.constant 5 : i32
    %76 = arith.index_cast %c5_i32 : i32 to index
    %c0_51 = arith.constant 0 : index
    %c0_52 = arith.constant 0 : index
    %77 = vector.load %arg9[%76, %c0_51, %c0_52] : memref<8x8x128xf32, #tpu.memory_space<vmem>>, vector<1x8x128xf32>
    %78 = vector.shape_cast %77 : vector<1x8x128xf32> to vector<8x128xf32>
    %79 = arith.truncf %71 : vector<8x128xf32> to vector<8x128xbf16>
    %c0_53 = arith.constant 0 : index
    %c0_54 = arith.constant 0 : index
    %c0_55 = arith.constant 0 : index
    %80 = vector.load %arg4[%c0_53, %c0_54, %c0_55] : memref<2x128x128xbf16, #tpu.memory_space<vmem>>, vector<1x128x128xbf16>
    %81 = vector.shape_cast %80 : vector<1x128x128xbf16> to vector<128x128xbf16>
    %cst_56 = arith.constant dense<0.000000e+00> : vector<8x128xf32>
    %82 = tpu.matmul %79, %81, %cst_56 {dimension_numbers = #tpu.dot_dimension_numbers<[1], [0], [0], [1], [0, 0, 1, 1], [], []>} : vector<8x128xbf16>, vector<128x128xbf16>, vector<8x128xf32> -> vector<8x128xf32>
    %83 = arith.addf %78, %82 : vector<8x128xf32>
    %84 = math.tanh %83 : vector<8x128xf32>
    %85 = arith.index_cast %c5_i32 : i32 to index
    %c0_57 = arith.constant 0 : index
    %c0_58 = arith.constant 0 : index
    %86 = vector.load %arg9[%85, %c0_57, %c0_58] : memref<8x8x128xf32, #tpu.memory_space<vmem>>, vector<1x8x128xf32>
    %87 = vector.shape_cast %86 : vector<1x8x128xf32> to vector<8x128xf32>
    %88 = vector.shape_cast %84 : vector<8x128xf32> to vector<1x8x128xf32>
    tpu.vector_store %arg9[%85, %c0_57, %c0_58], %88 {strides = array<i32>} : memref<8x8x128xf32, #tpu.memory_space<vmem>>, vector<1x8x128xf32>,
    %c6_i32 = arith.constant 6 : i32
    %89 = arith.index_cast %c6_i32 : i32 to index
    %c0_59 = arith.constant 0 : index
    %c0_60 = arith.constant 0 : index
    %90 = vector.load %arg9[%89, %c0_59, %c0_60] : memref<8x8x128xf32, #tpu.memory_space<vmem>>, vector<1x8x128xf32>
    %91 = vector.shape_cast %90 : vector<1x8x128xf32> to vector<8x128xf32>
    %92 = arith.truncf %84 : vector<8x128xf32> to vector<8x128xbf16>
    %c0_61 = arith.constant 0 : index
    %c0_62 = arith.constant 0 : index
    %c0_63 = arith.constant 0 : index
    %93 = vector.load %arg4[%c0_61, %c0_62, %c0_63] : memref<2x128x128xbf16, #tpu.memory_space<vmem>>, vector<1x128x128xbf16>
    %94 = vector.shape_cast %93 : vector<1x128x128xbf16> to vector<128x128xbf16>
    %cst_64 = arith.constant dense<0.000000e+00> : vector<8x128xf32>
    %95 = tpu.matmul %92, %94, %cst_64 {dimension_numbers = #tpu.dot_dimension_numbers<[1], [0], [0], [1], [0, 0, 1, 1], [], []>} : vector<8x128xbf16>, vector<128x128xbf16>, vector<8x128xf32> -> vector<8x128xf32>
    %96 = arith.addf %91, %95 : vector<8x128xf32>
    %97 = math.tanh %96 : vector<8x128xf32>
    %98 = arith.index_cast %c6_i32 : i32 to index
    %c0_65 = arith.constant 0 : index
    %c0_66 = arith.constant 0 : index
    %99 = vector.load %arg9[%98, %c0_65, %c0_66] : memref<8x8x128xf32, #tpu.memory_space<vmem>>, vector<1x8x128xf32>
    %100 = vector.shape_cast %99 : vector<1x8x128xf32> to vector<8x128xf32>
    %101 = vector.shape_cast %97 : vector<8x128xf32> to vector<1x8x128xf32>
    tpu.vector_store %arg9[%98, %c0_65, %c0_66], %101 {strides = array<i32>} : memref<8x8x128xf32, #tpu.memory_space<vmem>>, vector<1x8x128xf32>,
    %c7_i32 = arith.constant 7 : i32
    %102 = arith.index_cast %c7_i32 : i32 to index
    %c0_67 = arith.constant 0 : index
    %c0_68 = arith.constant 0 : index
    %103 = vector.load %arg9[%102, %c0_67, %c0_68] : memref<8x8x128xf32, #tpu.memory_space<vmem>>, vector<1x8x128xf32>
    %104 = vector.shape_cast %103 : vector<1x8x128xf32> to vector<8x128xf32>
    %105 = arith.truncf %97 : vector<8x128xf32> to vector<8x128xbf16>
    %c0_69 = arith.constant 0 : index
    %c0_70 = arith.constant 0 : index
    %c0_71 = arith.constant 0 : index
    %106 = vector.load %arg4[%c0_69, %c0_70, %c0_71] : memref<2x128x128xbf16, #tpu.memory_space<vmem>>, vector<1x128x128xbf16>
    %107 = vector.shape_cast %106 : vector<1x128x128xbf16> to vector<128x128xbf16>
    %cst_72 = arith.constant dense<0.000000e+00> : vector<8x128xf32>
    %108 = tpu.matmul %105, %107, %cst_72 {dimension_numbers = #tpu.dot_dimension_numbers<[1], [0], [0], [1], [0, 0, 1, 1], [], []>} : vector<8x128xbf16>, vector<128x128xbf16>, vector<8x128xf32> -> vector<8x128xf32>
    %109 = arith.addf %104, %108 : vector<8x128xf32>
    %110 = math.tanh %109 : vector<8x128xf32>
    %111 = arith.index_cast %c7_i32 : i32 to index
    %c0_73 = arith.constant 0 : index
    %c0_74 = arith.constant 0 : index
    %112 = vector.load %arg9[%111, %c0_73, %c0_74] : memref<8x8x128xf32, #tpu.memory_space<vmem>>, vector<1x8x128xf32>
    %113 = vector.shape_cast %112 : vector<1x8x128xf32> to vector<8x128xf32>
    %114 = vector.shape_cast %110 : vector<8x128xf32> to vector<1x8x128xf32>
    tpu.vector_store %arg9[%111, %c0_73, %c0_74], %114 {strides = array<i32>} : memref<8x8x128xf32, #tpu.memory_space<vmem>>, vector<1x8x128xf32>,
    %c8_i32 = arith.constant 8 : i32
    %c0_75 = arith.constant 0 : index
    %c0_76 = arith.constant 0 : index
    %c0_77 = arith.constant 0 : index
    %115 = vector.load %arg9[%c0_75, %c0_76, %c0_77] : memref<8x8x128xf32, #tpu.memory_space<vmem>>, vector<8x8x128xf32>
    %116 = arith.truncf %115 : vector<8x8x128xf32> to vector<8x8x128xbf16>
    %c0_78 = arith.constant 0 : index
    %c0_79 = arith.constant 0 : index
    %c0_80 = arith.constant 0 : index
    %117 = vector.load %arg3[%c0_78, %c0_79, %c0_80] : memref<1x128x128xbf16, #tpu.memory_space<vmem>>, vector<1x128x128xbf16>
    %118 = vector.shape_cast %117 : vector<1x128x128xbf16> to vector<128x128xbf16>
    %119 = vector.shape_cast %116 : vector<8x8x128xbf16> to vector<64x128xbf16>
    %cst_81 = arith.constant dense<0.000000e+00> : vector<64x128xf32>
    %120 = tpu.matmul %119, %118, %cst_81 {dimension_numbers = #tpu.dot_dimension_numbers<[1], [0], [0], [1], [0, 0, 1, 1], [], []>} : vector<64x128xbf16>, vector<128x128xbf16>, vector<64x128xf32> -> vector<64x128xf32>
    %c1 = arith.constant 1 : index
    %c0_82 = arith.constant 0 : index
    %c0_83 = arith.constant 0 : index
    %121 = vector.load %arg5[%c1, %c0_82, %c0_83] : memref<2x1x128xf32, #tpu.memory_space<vmem>>, vector<1x1x128xf32>
    %122 = vector.shape_cast %121 : vector<1x1x128xf32> to vector<1x128xf32>
    %123 = vector.broadcast %122 : vector<1x128xf32> to vector<64x128xf32>
    %124 = arith.addf %120, %123 : vector<64x128xf32>
    %125 = vector.shape_cast %124 : vector<64x128xf32> to vector<8x8x128xf32>
    %c0_84 = arith.constant 0 : index
    %c0_85 = arith.constant 0 : index
    %c0_86 = arith.constant 0 : index
    %126 = vector.load %arg9[%c0_84, %c0_85, %c0_86] : memref<8x8x128xf32, #tpu.memory_space<vmem>>, vector<8x8x128xf32>
    tpu.vector_store %arg9[%c0_84, %c0_85, %c0_86], %125 {strides = array<i32>} : memref<8x8x128xf32, #tpu.memory_space<vmem>>, vector<8x8x128xf32>,
    %cst_87 = arith.constant 0.000000e+00 : f32
    %127 = vector.broadcast %cst_87 : f32 to vector<8x128xf32>
    %c0_i32_88 = arith.constant 0 : i32
    %128 = arith.index_cast %c0_i32_88 : i32 to index
    %c0_89 = arith.constant 0 : index
    %c0_90 = arith.constant 0 : index
    %129 = vector.load %arg9[%128, %c0_89, %c0_90] : memref<8x8x128xf32, #tpu.memory_space<vmem>>, vector<1x8x128xf32>
    %130 = vector.shape_cast %129 : vector<1x8x128xf32> to vector<8x128xf32>
    %131 = arith.truncf %127 : vector<8x128xf32> to vector<8x128xbf16>
    %c1_91 = arith.constant 1 : index
    %c0_92 = arith.constant 0 : index
    %c0_93 = arith.constant 0 : index
    %132 = vector.load %arg4[%c1_91, %c0_92, %c0_93] : memref<2x128x128xbf16, #tpu.memory_space<vmem>>, vector<1x128x128xbf16>
    %133 = vector.shape_cast %132 : vector<1x128x128xbf16> to vector<128x128xbf16>
    %cst_94 = arith.constant dense<0.000000e+00> : vector<8x128xf32>
    %134 = tpu.matmul %131, %133, %cst_94 {dimension_numbers = #tpu.dot_dimension_numbers<[1], [0], [0], [1], [0, 0, 1, 1], [], []>} : vector<8x128xbf16>, vector<128x128xbf16>, vector<8x128xf32> -> vector<8x128xf32>
    %135 = arith.addf %130, %134 : vector<8x128xf32>
    %136 = math.tanh %135 : vector<8x128xf32>
    %c1_i32_95 = arith.constant 1 : i32
    %137 = arith.index_cast %c1_i32_95 : i32 to index
    %c0_96 = arith.constant 0 : index
    %c0_97 = arith.constant 0 : index
    %138 = vector.load %arg9[%137, %c0_96, %c0_97] : memref<8x8x128xf32, #tpu.memory_space<vmem>>, vector<1x8x128xf32>
    %139 = vector.shape_cast %138 : vector<1x8x128xf32> to vector<8x128xf32>
    %140 = arith.truncf %136 : vector<8x128xf32> to vector<8x128xbf16>
    %c1_98 = arith.constant 1 : index
    %c0_99 = arith.constant 0 : index
    %c0_100 = arith.constant 0 : index
    %141 = vector.load %arg4[%c1_98, %c0_99, %c0_100] : memref<2x128x128xbf16, #tpu.memory_space<vmem>>, vector<1x128x128xbf16>
    %142 = vector.shape_cast %141 : vector<1x128x128xbf16> to vector<128x128xbf16>
    %cst_101 = arith.constant dense<0.000000e+00> : vector<8x128xf32>
    %143 = tpu.matmul %140, %142, %cst_101 {dimension_numbers = #tpu.dot_dimension_numbers<[1], [0], [0], [1], [0, 0, 1, 1], [], []>} : vector<8x128xbf16>, vector<128x128xbf16>, vector<8x128xf32> -> vector<8x128xf32>
    %144 = arith.addf %139, %143 : vector<8x128xf32>
    %145 = math.tanh %144 : vector<8x128xf32>
    %c2_i32_102 = arith.constant 2 : i32
    %146 = arith.index_cast %c2_i32_102 : i32 to index
    %c0_103 = arith.constant 0 : index
    %c0_104 = arith.constant 0 : index
    %147 = vector.load %arg9[%146, %c0_103, %c0_104] : memref<8x8x128xf32, #tpu.memory_space<vmem>>, vector<1x8x128xf32>
    %148 = vector.shape_cast %147 : vector<1x8x128xf32> to vector<8x128xf32>
    %149 = arith.truncf %145 : vector<8x128xf32> to vector<8x128xbf16>
    %c1_105 = arith.constant 1 : index
    %c0_106 = arith.constant 0 : index
    %c0_107 = arith.constant 0 : index
    %150 = vector.load %arg4[%c1_105, %c0_106, %c0_107] : memref<2x128x128xbf16, #tpu.memory_space<vmem>>, vector<1x128x128xbf16>
    %151 = vector.shape_cast %150 : vector<1x128x128xbf16> to vector<128x128xbf16>
    %cst_108 = arith.constant dense<0.000000e+00> : vector<8x128xf32>
    %152 = tpu.matmul %149, %151, %cst_108 {dimension_numbers = #tpu.dot_dimension_numbers<[1], [0], [0], [1], [0, 0, 1, 1], [], []>} : vector<8x128xbf16>, vector<128x128xbf16>, vector<8x128xf32> -> vector<8x128xf32>
    %153 = arith.addf %148, %152 : vector<8x128xf32>
    %154 = math.tanh %153 : vector<8x128xf32>
    %c3_i32_109 = arith.constant 3 : i32
    %155 = arith.index_cast %c3_i32_109 : i32 to index
    %c0_110 = arith.constant 0 : index
    %c0_111 = arith.constant 0 : index
    %156 = vector.load %arg9[%155, %c0_110, %c0_111] : memref<8x8x128xf32, #tpu.memory_space<vmem>>, vector<1x8x128xf32>
    %157 = vector.shape_cast %156 : vector<1x8x128xf32> to vector<8x128xf32>
    %158 = arith.truncf %154 : vector<8x128xf32> to vector<8x128xbf16>
    %c1_112 = arith.constant 1 : index
    %c0_113 = arith.constant 0 : index
    %c0_114 = arith.constant 0 : index
    %159 = vector.load %arg4[%c1_112, %c0_113, %c0_114] : memref<2x128x128xbf16, #tpu.memory_space<vmem>>, vector<1x128x128xbf16>
    %160 = vector.shape_cast %159 : vector<1x128x128xbf16> to vector<128x128xbf16>
    %cst_115 = arith.constant dense<0.000000e+00> : vector<8x128xf32>
    %161 = tpu.matmul %158, %160, %cst_115 {dimension_numbers = #tpu.dot_dimension_numbers<[1], [0], [0], [1], [0, 0, 1, 1], [], []>} : vector<8x128xbf16>, vector<128x128xbf16>, vector<8x128xf32> -> vector<8x128xf32>
    %162 = arith.addf %157, %161 : vector<8x128xf32>
    %163 = math.tanh %162 : vector<8x128xf32>
    %c4_i32_116 = arith.constant 4 : i32
    %164 = arith.index_cast %c4_i32_116 : i32 to index
    %c0_117 = arith.constant 0 : index
    %c0_118 = arith.constant 0 : index
    %165 = vector.load %arg9[%164, %c0_117, %c0_118] : memref<8x8x128xf32, #tpu.memory_space<vmem>>, vector<1x8x128xf32>
    %166 = vector.shape_cast %165 : vector<1x8x128xf32> to vector<8x128xf32>
    %167 = arith.truncf %163 : vector<8x128xf32> to vector<8x128xbf16>
    %c1_119 = arith.constant 1 : index
    %c0_120 = arith.constant 0 : index
    %c0_121 = arith.constant 0 : index
    %168 = vector.load %arg4[%c1_119, %c0_120, %c0_121] : memref<2x128x128xbf16, #tpu.memory_space<vmem>>, vector<1x128x128xbf16>
    %169 = vector.shape_cast %168 : vector<1x128x128xbf16> to vector<128x128xbf16>
    %cst_122 = arith.constant dense<0.000000e+00> : vector<8x128xf32>
    %170 = tpu.matmul %167, %169, %cst_122 {dimension_numbers = #tpu.dot_dimension_numbers<[1], [0], [0], [1], [0, 0, 1, 1], [], []>} : vector<8x128xbf16>, vector<128x128xbf16>, vector<8x128xf32> -> vector<8x128xf32>
    %171 = arith.addf %166, %170 : vector<8x128xf32>
    %172 = math.tanh %171 : vector<8x128xf32>
    %c5_i32_123 = arith.constant 5 : i32
    %173 = arith.index_cast %c5_i32_123 : i32 to index
    %c0_124 = arith.constant 0 : index
    %c0_125 = arith.constant 0 : index
    %174 = vector.load %arg9[%173, %c0_124, %c0_125] : memref<8x8x128xf32, #tpu.memory_space<vmem>>, vector<1x8x128xf32>
    %175 = vector.shape_cast %174 : vector<1x8x128xf32> to vector<8x128xf32>
    %176 = arith.truncf %172 : vector<8x128xf32> to vector<8x128xbf16>
    %c1_126 = arith.constant 1 : index
    %c0_127 = arith.constant 0 : index
    %c0_128 = arith.constant 0 : index
    %177 = vector.load %arg4[%c1_126, %c0_127, %c0_128] : memref<2x128x128xbf16, #tpu.memory_space<vmem>>, vector<1x128x128xbf16>
    %178 = vector.shape_cast %177 : vector<1x128x128xbf16> to vector<128x128xbf16>
    %cst_129 = arith.constant dense<0.000000e+00> : vector<8x128xf32>
    %179 = tpu.matmul %176, %178, %cst_129 {dimension_numbers = #tpu.dot_dimension_numbers<[1], [0], [0], [1], [0, 0, 1, 1], [], []>} : vector<8x128xbf16>, vector<128x128xbf16>, vector<8x128xf32> -> vector<8x128xf32>
    %180 = arith.addf %175, %179 : vector<8x128xf32>
    %181 = math.tanh %180 : vector<8x128xf32>
    %c6_i32_130 = arith.constant 6 : i32
    %182 = arith.index_cast %c6_i32_130 : i32 to index
    %c0_131 = arith.constant 0 : index
    %c0_132 = arith.constant 0 : index
    %183 = vector.load %arg9[%182, %c0_131, %c0_132] : memref<8x8x128xf32, #tpu.memory_space<vmem>>, vector<1x8x128xf32>
    %184 = vector.shape_cast %183 : vector<1x8x128xf32> to vector<8x128xf32>
    %185 = arith.truncf %181 : vector<8x128xf32> to vector<8x128xbf16>
    %c1_133 = arith.constant 1 : index
    %c0_134 = arith.constant 0 : index
    %c0_135 = arith.constant 0 : index
    %186 = vector.load %arg4[%c1_133, %c0_134, %c0_135] : memref<2x128x128xbf16, #tpu.memory_space<vmem>>, vector<1x128x128xbf16>
    %187 = vector.shape_cast %186 : vector<1x128x128xbf16> to vector<128x128xbf16>
    %cst_136 = arith.constant dense<0.000000e+00> : vector<8x128xf32>
    %188 = tpu.matmul %185, %187, %cst_136 {dimension_numbers = #tpu.dot_dimension_numbers<[1], [0], [0], [1], [0, 0, 1, 1], [], []>} : vector<8x128xbf16>, vector<128x128xbf16>, vector<8x128xf32> -> vector<8x128xf32>
    %189 = arith.addf %184, %188 : vector<8x128xf32>
    %190 = math.tanh %189 : vector<8x128xf32>
    %c7_i32_137 = arith.constant 7 : i32
    %191 = arith.index_cast %c7_i32_137 : i32 to index
    %c0_138 = arith.constant 0 : index
    %c0_139 = arith.constant 0 : index
    %192 = vector.load %arg9[%191, %c0_138, %c0_139] : memref<8x8x128xf32, #tpu.memory_space<vmem>>, vector<1x8x128xf32>
    %193 = vector.shape_cast %192 : vector<1x8x128xf32> to vector<8x128xf32>
    %194 = arith.truncf %190 : vector<8x128xf32> to vector<8x128xbf16>
    %c1_140 = arith.constant 1 : index
    %c0_141 = arith.constant 0 : index
    %c0_142 = arith.constant 0 : index
    %195 = vector.load %arg4[%c1_140, %c0_141, %c0_142] : memref<2x128x128xbf16, #tpu.memory_space<vmem>>, vector<1x128x128xbf16>
    %196 = vector.shape_cast %195 : vector<1x128x128xbf16> to vector<128x128xbf16>
    %cst_143 = arith.constant dense<0.000000e+00> : vector<8x128xf32>
    %197 = tpu.matmul %194, %196, %cst_143 {dimension_numbers = #tpu.dot_dimension_numbers<[1], [0], [0], [1], [0, 0, 1, 1], [], []>} : vector<8x128xbf16>, vector<128x128xbf16>, vector<8x128xf32> -> vector<8x128xf32>
    %198 = arith.addf %193, %197 : vector<8x128xf32>
    %199 = math.tanh %198 : vector<8x128xf32>
    %c8_i32_144 = arith.constant 8 : i32
    %200 = arith.truncf %199 : vector<8x128xf32> to vector<8x128xbf16>
    %c0_145 = arith.constant 0 : index
    %c0_146 = arith.constant 0 : index
    %201 = vector.load %arg6[%c0_145, %c0_146] : memref<128x128xbf16, #tpu.memory_space<vmem>>, vector<128x128xbf16>
    %cst_147 = arith.constant dense<0.000000e+00> : vector<8x128xf32>
    %202 = tpu.matmul %200, %201, %cst_147 {dimension_numbers = #tpu.dot_dimension_numbers<[1], [0], [0], [1], [0, 0, 1, 1], [], []>} : vector<8x128xbf16>, vector<128x128xbf16>, vector<8x128xf32> -> vector<8x128xf32>
    %c0_148 = arith.constant 0 : index
    %c0_149 = arith.constant 0 : index
    %203 = vector.load %arg7[%c0_148, %c0_149] : memref<1x128xf32, #tpu.memory_space<vmem>>, vector<1x128xf32>
    %204 = vector.broadcast %203 : vector<1x128xf32> to vector<8x128xf32>
    %205 = arith.addf %202, %204 : vector<8x128xf32>
    %c0_150 = arith.constant 0 : index
    %c0_151 = arith.constant 0 : index
    %206 = vector.load %arg8[%c0_150, %c0_151] : memref<8x128xf32, #tpu.memory_space<vmem>>, vector<8x128xf32>
    tpu.vector_store %arg8[%c0_150, %c0_151], %205 {strides = array<i32>} : memref<8x128xf32, #tpu.memory_space<vmem>>, vector<8x128xf32>,
    return
  }
  func.func @transform_0(%arg0: i32) -> (i32, i32, i32) {
    %c0_i32 = arith.constant 0 : i32
    %c0_i32_0 = arith.constant 0 : i32
    %c0_i32_1 = arith.constant 0 : i32
    return %c0_i32, %arg0, %c0_i32_0 : i32, i32, i32
  }
  func.func @transform_1(%arg0: i32) -> (i32, i32) {
    %c0_i32 = arith.constant 0 : i32
    %c0_i32_0 = arith.constant 0 : i32
    %c0_i32_1 = arith.constant 0 : i32
    return %c0_i32, %c0_i32_0 : i32, i32
  }
  func.func @transform_2(%arg0: i32) -> (i32, i32, i32) {
    %c0_i32 = arith.constant 0 : i32
    %c0_i32_0 = arith.constant 0 : i32
    %c0_i32_1 = arith.constant 0 : i32
    %c0_i32_2 = arith.constant 0 : i32
    return %c0_i32, %c0_i32_0, %c0_i32_1 : i32, i32, i32
  }
  func.func @transform_3(%arg0: i32) -> (i32, i32, i32) {
    %c0_i32 = arith.constant 0 : i32
    %c0_i32_0 = arith.constant 0 : i32
    %c0_i32_1 = arith.constant 0 : i32
    %c0_i32_2 = arith.constant 0 : i32
    return %c0_i32, %c0_i32_0, %c0_i32_1 : i32, i32, i32
  }
  func.func @transform_4(%arg0: i32) -> (i32, i32, i32) {
    %c0_i32 = arith.constant 0 : i32
    %c0_i32_0 = arith.constant 0 : i32
    %c0_i32_1 = arith.constant 0 : i32
    %c0_i32_2 = arith.constant 0 : i32
    return %c0_i32, %c0_i32_0, %c0_i32_1 : i32, i32, i32
  }
  func.func @transform_5(%arg0: i32) -> (i32, i32) {
    %c0_i32 = arith.constant 0 : i32
    %c0_i32_0 = arith.constant 0 : i32
    %c0_i32_1 = arith.constant 0 : i32
    return %c0_i32, %c0_i32_0 : i32, i32
  }
  func.func @transform_6(%arg0: i32) -> (i32, i32) {
    %c0_i32 = arith.constant 0 : i32
    %c0_i32_0 = arith.constant 0 : i32
    %c0_i32_1 = arith.constant 0 : i32
    return %c0_i32, %c0_i32_0 : i32, i32
  }
  func.func @transform_7(%arg0: i32) -> (i32, i32) {
    %c0_i32 = arith.constant 0 : i32
    %c0_i32_0 = arith.constant 0 : i32
    return %arg0, %c0_i32 : i32, i32
  }
}

</mosaic_0001>

<bundles_post_ra>
// kernel: simple_rnn_model.1
= control target key start
LH: loop header
LB: loop body
LE: loop exit
PB: predicated region body
PF: predicated region fallthrough
CT: control target
= control target key end

     0   :  { %v2627_v1 = vmov 0.0   ;;  %vm2628_vm0 = vmmov 0   ;;  %v2629_v21 = vmov 0   ;;  %s3318_s1 = inlined_call_operand.vmem [shape: bf16[128,128], index: 1, kind: input, shape index: {}]   ;;  %s3319_s3 = inlined_call_operand.vmem [shape: bf16[2,128,128], index: 3, kind: input, shape index: {}]   ;;  %s3320_s0 = inlined_call_operand.vmem [shape: bf16[8,8,128], index: 0, kind: input, shape index: {}]   ;;  %s3321_s4 = inlined_call_operand.vmem [shape: f32[2,1,128], index: 4, kind: input, shape index: {}]   ;;  %s3322_s2 = inlined_call_operand.vmem [shape: bf16[1,128,128], index: 2, kind: input, shape index: {}]   ;;  %s3323_s5 = inlined_call_operand.vmem [shape: bf16[128,128], index: 5, kind: input, shape index: {}]   ;;  %s3324_s6 = inlined_call_operand.vmem [shape: f32[1,128], index: 6, kind: input, shape index: {}]   ;;  %s3325_s7 = inlined_call_operand.vmem [shape: f32[8,128], index: 7, kind: output, shape index: {}]  }
   0x1   :  { %v2495_v0 = vld [vmem:[%s3318_s1] sm:$0xff]   ;;  %2128 = vmatprep.subr.bf16.mxu1 %v2627_v1  ;;  %2144 = vmatprep.mubr.msk.bf16.mxu1 %vm2628_vm0, %v2627_v1  ;;  %v2497_v3 = vld [vmem:[%s3318_s1 + $0x8] sm:$0xff]   ;;  %v2499_v5 = vld [vmem:[%s3318_s1 + $0x10] sm:$0xff]  }
   0x2   :  { %v2496_v2 = vld [vmem:[%s3319_s3] sm:$0xff]   ;;  %2104 = vmatprep.subr.bf16.mxu0 %v2495_v0  ;;  %v2498_v4 = vld [vmem:[%s3319_s3 + $0x8] sm:$0xff]   ;;  %v2500_v6 = vld [vmem:[%s3319_s3 + $0x10] sm:$0xff]  }
   0x3   :  { %2105 = vmatpush3.bf16.msra.mxu0 %v2495_v0  ;;  %2129 = vmatpush3.bf16.msra.mxu1 %v2496_v2  ;;  %v2501_v7 = vld [vmem:[%s3318_s1 + $0x18] sm:$0xff]   ;;  %v2503_v9 = vld [vmem:[%s3318_s1 + $0x20] sm:$0xff]   ;;  %v2505_v11 = vld [vmem:[%s3318_s1 + $0x28] sm:$0xff]  }
   0x4   :  { %2106 = vmatprep.subr.bf16.mxu0 %v2497_v3  ;;  %2130 = vmatprep.subr.bf16.mxu1 %v2627_v1  ;;  %v2502_v8 = vld [vmem:[%s3319_s3 + $0x18] sm:$0xff]   ;;  %v2504_v10 = vld [vmem:[%s3319_s3 + $0x20] sm:$0xff]   ;;  %v2506_v13 = vld [vmem:[%s3319_s3 + $0x28] sm:$0xff]  }
   0x5   :  { %v2511_v12 = vld [vmem:[%s3320_s0] sm:$0xff]   ;;  %v2507_v14 = vld [vmem:[%s3318_s1 + $0x30] sm:$0xff]   ;;  %v2509_v16 = vld [vmem:[%s3318_s1 + $0x38] sm:$0xff]  }
   0x6   :  { %2120 = vmatprep.mubr.bf16.mxu0 %v2511_v12  ;;  %v2508_v15 = vld [vmem:[%s3319_s3 + $0x30] sm:$0xff]   ;;  %v2510_v17 = vld [vmem:[%s3319_s3 + $0x38] sm:$0xff]   ;;  %v2512_v18 = vld [vmem:[%s3320_s0 + $0x8] sm:$0xff]  }
   0x7   :  { %2107 = vmatpush3.bf16.msra.mxu0 %v2497_v3  ;;  %2131 = vmatpush3.bf16.msra.mxu1 %v2498_v4  ;;  %v2513_v19 = vld [vmem:[%s3319_s3] sm:$0xff]   ;;  %v2514_v20 = vld [vmem:[%s3319_s3 + $0x8] sm:$0xff]   ;;  %v2515_v22 = vld [vmem:[%s3319_s3 + $0x10] sm:$0xff]  }
   0x8   :  { %2108 = vmatprep.subr.bf16.mxu0 %v2499_v5  ;;  %2132 = vmatprep.subr.bf16.mxu1 %v2627_v1  ;;  %v2516_v23 = vld [vmem:[%s3319_s3 + $0x18] sm:$0xff]   ;;  %v2517_v24 = vld [vmem:[%s3319_s3 + $0x20] sm:$0xff]   ;;  %v2518_v25 = vld [vmem:[%s3320_s0 + $0x10] sm:$0xff]  }
   0x9   :  { %v2519_v26 = vld [vmem:[%s3320_s0 + $0x18] sm:$0xff]   ;;  %v2520_v27 = vld [vmem:[%s3319_s3 + $0x28] sm:$0xff]   ;;  %v2521_v28 = vld [vmem:[%s3319_s3 + $0x30] sm:$0xff]  }
   0xa   :  { %v2522_v29 = vld [vmem:[%s3319_s3 + $0x38] sm:$0xff]   ;;  %v2523_v30 = vld [vmem:[%s3319_s3] sm:$0xff]   ;;  %v2524_v31 = vld [vmem:[%s3319_s3 + $0x8] sm:$0xff]  }
   0xb   :  { %2109 = vmatpush3.bf16.msra.mxu0 %v2499_v5  ;;  %2133 = vmatpush3.bf16.msra.mxu1 %v2500_v6  ;;  %v2525_v32 = vld [vmem:[%s3319_s3 + $0x10] sm:$0xff]   ;;  %v2526_v33 = vld [vmem:[%s3319_s3 + $0x18] sm:$0xff]   ;;  %v2798_v34 = vld [vmem:[%s3321_s4] ss:$0 sm:$0xff] }
   0xc   :  { %2110 = vmatprep.subr.bf16.mxu0 %v2501_v7  ;;  %2134 = vmatprep.subr.bf16.mxu1 %v2627_v1  ;;  %v2527_v51 = vld [vmem:[%s3319_s3 + $0x20] sm:$0xff]   ;;  %v2528_v52 = vld [vmem:[%s3319_s3 + $0x28] sm:$0xff]   ;;  %v2529_v53 = vld [vmem:[%s3319_s3 + $0x30] sm:$0xff]  }
   0xd   :  { %v2530_v54 = vld [vmem:[%s3319_s3 + $0x38] sm:$0xff]   ;;  %v2531_v55 = vld [vmem:[%s3319_s3] sm:$0xff]   ;;  %v2532_v56 = vld [vmem:[%s3319_s3 + $0x8] sm:$0xff]  }
   0xe   :  { %v2533_v57 = vld [vmem:[%s3319_s3 + $0x10] sm:$0xff]   ;;  %v2534_v58 = vld [vmem:[%s3319_s3 + $0x18] sm:$0xff]   ;;  %v2535_v4 = vld [vmem:[%s3319_s3 + $0x20] sm:$0xff]  }
   0xf   :  { %2111 = vmatpush3.bf16.msra.mxu0 %v2501_v7  ;;  %2135 = vmatpush3.bf16.msra.mxu1 %v2502_v8  ;;  %v2536_v5 = vld [vmem:[%s3319_s3 + $0x28] sm:$0xff]   ;;  %v2537_v6 = vld [vmem:[%s3319_s3 + $0x30] sm:$0xff]   ;;  %v2538_v7 = vld [vmem:[%s3319_s3 + $0x38] sm:$0xff]  }
  0x10   :  { %2112 = vmatprep.subr.bf16.mxu0 %v2503_v9  ;;  %2136 = vmatprep.subr.bf16.mxu1 %v2627_v1  ;;  %v2539_v8 = vld [vmem:[%s3319_s3] sm:$0xff]  }
  0x13   :  { %2113 = vmatpush3.bf16.msra.mxu0 %v2503_v9  ;;  %2137 = vmatpush3.bf16.msra.mxu1 %v2504_v10  ;;  %v2540_v9 = vld [vmem:[%s3319_s3 + $0x8] sm:$0xff]   ;;  %v2541_v10 = vld [vmem:[%s3319_s3 + $0x10] sm:$0xff]  }
  0x14   :  { %2114 = vmatprep.subr.bf16.mxu0 %v2505_v11  ;;  %2138 = vmatprep.subr.bf16.mxu1 %v2627_v1 }
  0x17   :  { %2115 = vmatpush3.bf16.msra.mxu0 %v2505_v11  ;;  %2139 = vmatpush3.bf16.msra.mxu1 %v2506_v13  ;;  %v2542_v11 = vld [vmem:[%s3319_s3 + $0x18] sm:$0xff]  }
  0x18   :  { %2116 = vmatprep.subr.bf16.mxu0 %v2507_v14  ;;  %2140 = vmatprep.subr.bf16.mxu1 %v2627_v1 }
  0x1b   :  { %2117 = vmatpush3.bf16.msra.mxu0 %v2507_v14  ;;  %2141 = vmatpush3.bf16.msra.mxu1 %v2508_v15 }
  0x1c   :  { %2118 = vmatprep.subr.bf16.mxu0 %v2509_v16  ;;  %2142 = vmatprep.subr.bf16.mxu1 %v2627_v1 }
  0x1f   :  { %2119 = vmatpush3.bf16.msra.mxu0 %v2509_v16  ;;  %2143 = vmatpush3.bf16.msra.mxu1 %v2510_v17 }
  0x20   :  { %2148 = vmatprep.subr.bf16.mxu0 %v2627_v1  ;;  %2168 = vmatprep.subr.bf16.mxu1 %v2627_v1 }
  0x22   :  { %2121 = vmatmul.mubr.bf16.vlgmr.msra.gmra.mrb[0].mxu0 %v2512_v18  ;;  %2145 = vmatmul.mubr.bf16.vlgmr.msra.gmra.mrb[0].mxu1 %v2629_v21 }
  0x23   :  { %2149 = vmatpush3.bf16.msra.mxu0 %v2513_v19  ;;  %2184 = vmatprep.mubr.msk.bf16.mxu1 %vm2628_vm0, %v2627_v1 }
  0x24   :  { %2150 = vmatprep.subr.bf16.mxu0 %v2627_v1  ;;  %2124 = vmatprep.mubr.bf16.mxu0 %v2518_v25  ;;  %v2547_v25 = vld [vmem:[%s3319_s3] sm:$0xff]  }
  0x25   :  { %2169 = vmatpush3.bf16.msra.mxu1 %v2523_v30 }
  0x26   :  { %2170 = vmatprep.subr.bf16.mxu1 %v2627_v1 }
  0x27   :  { %2151 = vmatpush3.bf16.msra.mxu0 %v2514_v20  ;;  %v2543_v20 = vld [vmem:[%s3319_s3 + $0x20] sm:$0xff]  }
  0x28   :  { %2152 = vmatprep.subr.bf16.mxu0 %v2627_v1 }
  0x29   :  { %2171 = vmatpush3.bf16.msra.mxu1 %v2524_v31 }
  0x2a   :  { %2125 = vmatmul.mubr.bf16.gmra.mrb[4].mxu0 %v2519_v26  ;;  %2172 = vmatprep.subr.bf16.mxu1 %v2627_v1  ;;  %v2548_v26 = vld [vmem:[%s3319_s3 + $0x8] sm:$0xff]  }
  0x2b   :  { %2153 = vmatpush3.bf16.msra.mxu0 %v2515_v22  ;;  %2164 = vmatprep.mubr.msk.bf16.mxu0 %vm2628_vm0, %v2627_v1  ;;  %v2544_v22 = vld [vmem:[%s3319_s3 + $0x28] sm:$0xff]  }
  0x2c   :  { %2154 = vmatprep.subr.bf16.mxu0 %v2627_v1 }
  0x2d   :  { %2173 = vmatpush3.bf16.msra.mxu1 %v2525_v32 }
  0x2e   :  { %2174 = vmatprep.subr.bf16.mxu1 %v2627_v1 }
  0x2f   :  { %2155 = vmatpush3.bf16.msra.mxu0 %v2516_v23  ;;  %v2545_v23 = vld [vmem:[%s3319_s3 + $0x30] sm:$0xff]  }
  0x30   :  { %2156 = vmatprep.subr.bf16.mxu0 %v2627_v1 }
  0x31   :  { %2175 = vmatpush3.bf16.msra.mxu1 %v2526_v33 }
  0x32   :  { %2176 = vmatprep.subr.bf16.mxu1 %v2627_v1 }
  0x33   :  { %2157 = vmatpush3.bf16.msra.mxu0 %v2517_v24  ;;  %v2546_v24 = vld [vmem:[%s3319_s3 + $0x38] sm:$0xff]  }
  0x34   :  { %2158 = vmatprep.subr.bf16.mxu0 %v2627_v1 }
  0x35   :  { %2177 = vmatpush3.bf16.msra.mxu1 %v2527_v51 }
  0x36   :  { %2178 = vmatprep.subr.bf16.mxu1 %v2627_v1 }
  0x37   :  { %2159 = vmatpush3.bf16.msra.mxu0 %v2520_v27  ;;  %v2549_v27 = vld [vmem:[%s3319_s3 + $0x10] sm:$0xff]  }
  0x38   :  { %2160 = vmatprep.subr.bf16.mxu0 %v2627_v1 }
  0x39   :  { %2179 = vmatpush3.bf16.msra.mxu1 %v2528_v52 }
  0x3a   :  { %2180 = vmatprep.subr.bf16.mxu1 %v2627_v1 }
  0x3b   :  { %2161 = vmatpush3.bf16.msra.mxu0 %v2521_v28  ;;  %v2550_v28 = vld [vmem:[%s3319_s3 + $0x18] sm:$0xff]  }
  0x3c   :  { %2162 = vmatprep.subr.bf16.mxu0 %v2627_v1 }
  0x3d   :  { %2181 = vmatpush3.bf16.msra.mxu1 %v2529_v53 }
  0x3e   :  { %2182 = vmatprep.subr.bf16.mxu1 %v2627_v1 }
  0x3f   :  { %2163 = vmatpush3.bf16.msra.mxu0 %v2522_v29 }
  0x40   :  { %2188 = vmatprep.subr.bf16.mxu0 %v2627_v1 }
  0x41   :  { %2183 = vmatpush3.bf16.msra.mxu1 %v2530_v54 }
  0x42   :  { %2208 = vmatprep.subr.bf16.mxu1 %v2627_v1 }
  0xf5   :  { %v2800_v35 = vpop.f32.mrb[0].mxu0  ;;  %v302_v36 = vpop.f32.mrb[0].mxu1 }
  0xf6   :  { %v164_v37 = vpop.f32.mrb[1].mxu0  ;;  %v2146_v38 = vpop.f32.mrb[1].mxu1  ;;  %v173_v12 = vadd.f32 %v2800_v35, %v2798_v34 }
  0xf7   :  { %v165_v39 = vadd.f32 %v2798_v34, %v164_v37  ;;  %v2803_v40 = vpop.f32.mrb[2].mxu0  ;;  %v305_v41 = vpop.f32.mrb[2].mxu1  ;;  %v2551_v38 = vld [vmem:[%s3319_s3 + $0x20] sm:$0xff]  }
  0xf8   :  { %v167_v42 = vpop.f32.mrb[3].mxu0  ;;  %v2147_v43 = vpop.f32.mrb[3].mxu1  ;;  %v176_v29 = vadd.f32 %v2803_v40, %v2798_v34  ;;  %v2553_v40 = vld [vmem:[%s3319_s3 + $0x30] sm:$0xff]   ;;  %v2554_v41 = vld [vmem:[%s3319_s3 + $0x38] sm:$0xff]  }
  0xf9   :  { %v308_v44 = vadd.f32 %v302_v36, %v165_v39  ;;  %v168_v59 = vadd.f32 %v2798_v34, %v167_v42  ;;  %v2552_v39 = vld [vmem:[%s3319_s3 + $0x28] sm:$0xff]   ;;  %v2555_v42 = vld [vmem:[%s3319_s3] sm:$0xff]  }
  0xfa   :  { %v2556_v43 = vld [vmem:[%s3319_s3 + $0x8] sm:$0xff]  }
  0xfb   :  { %2595 = vtanh.f32 %v308_v44  ;;  %v2557_v44 = vld [vmem:[%s3319_s3 + $0x10] sm:$0xff]  }
  0xfd   :  { %v2811_v47 = vpop.f32.mrb[4].mxu0 }
  0xfe   :  { %v2813_v48 = vpop.f32.mrb[5].mxu0 }
  0xff   :  { %v2815_v49 = vpop.f32.mrb[6].mxu0  ;;  %v181_v51 = vadd.f32 %v2798_v34, %v2813_v48  ;;  %v2560_v48 = vld [vmem:[%s3319_s3 + $0x28] sm:$0xff]  }
 0x100   :  { %v2817_v50 = vpop.f32.mrb[7].mxu0 }
 0x105   :  { %v2805_v45 = vpop.eup %2595 }
 0x106   :  { %v313_v46 = vpack.c.bf16 %v2805_v45, %v2805_v45 }
 0x108   :  { %2165 = vmatmul.mubr.bf16.vlgmr.msra.gmra.mrb[8].mxu0 %v313_v46  ;;  %v2558_v46 = vld [vmem:[%s3319_s3 + $0x18] sm:$0xff]  }
 0x109   :  { %2204 = vmatprep.mubr.msk.bf16.mxu0 %vm2628_vm0, %v2627_v1  ;;  %2189 = vmatpush3.bf16.msra.mxu0 %v2531_v55 }
 0x10a   :  { %2190 = vmatprep.subr.bf16.mxu0 %v2627_v1 }
 0x10d   :  { %2191 = vmatpush3.bf16.msra.mxu0 %v2532_v56 }
 0x10e   :  { %2192 = vmatprep.subr.bf16.mxu0 %v2627_v1 }
 0x111   :  { %2193 = vmatpush3.bf16.msra.mxu0 %v2533_v57 }
 0x112   :  { %2194 = vmatprep.subr.bf16.mxu0 %v2627_v1 }
 0x115   :  { %2195 = vmatpush3.bf16.msra.mxu0 %v2534_v58 }
 0x116   :  { %2196 = vmatprep.subr.bf16.mxu0 %v2627_v1 }
 0x119   :  { %2197 = vmatpush3.bf16.msra.mxu0 %v2535_v4  ;;  %v2574_v4 = vld [vmem:[%s3319_s3 + $0x18] sm:$0xff]  }
 0x11a   :  { %2198 = vmatprep.subr.bf16.mxu0 %v2627_v1 }
 0x11d   :  { %2199 = vmatpush3.bf16.msra.mxu0 %v2536_v5  ;;  %v184_v5 = vadd.f32 %v2798_v34, %v2817_v50  ;;  %v2565_v50 = vld [vmem:[%s3322_s2 + $0x10] sm:$0xff]  }
 0x11e   :  { %2200 = vmatprep.subr.bf16.mxu0 %v2627_v1 }
 0x121   :  { %2201 = vmatpush3.bf16.msra.mxu0 %v2537_v6 }
 0x122   :  { %2202 = vmatprep.subr.bf16.mxu0 %v2627_v1 }
 0x125   :  { %2203 = vmatpush3.bf16.msra.mxu0 %v2538_v7 }
 0x126   :  { %2228 = vmatprep.subr.bf16.mxu0 %v2627_v1 }
 0x1db   :  { %v412_v60 = vpop.f32.mrb[8].mxu0 }
 0x1dc   :  { %v418_v61 = vadd.f32 %v412_v60, %v168_v59  ;;  %v2166_v62 = vpop.f32.mrb[9].mxu0  ;;  %v2559_v59 = vld [vmem:[%s3319_s3 + $0x20] sm:$0xff]   ;;  %v2561_v60 = vld [vmem:[%s3319_s3 + $0x30] sm:$0xff]  }
 0x1dd   :  { %v415_v63 = vpop.f32.mrb[10].mxu0  ;;  %v2563_v62 = vld [vmem:[%s3322_s2] sm:$0xff]  }
 0x1de   :  { %2597 = vtanh.f32 %v418_v61  ;;  %v2167_v0 = vpop.f32.mrb[11].mxu0  ;;  %v2562_v61 = vld [vmem:[%s3319_s3 + $0x38] sm:$0xff]   ;;  %v2571_v63 = vld [vmem:[%s3319_s3] sm:$0xff]  }
 0x1df   :  { %v2572_v0 = vld [vmem:[%s3319_s3 + $0x8] sm:$0xff]  }
 0x1e8   :  { %v2852_v2 = vpop.eup %2597 }
 0x1e9   :  { %v423_v3 = vpack.c.bf16 %v2852_v2, %v2852_v2 }
 0x1eb   :  { %2185 = vmatmul.mubr.bf16.vlgmr.msra.gmra.mrb[4].mxu1 %v423_v3  ;;  %v2573_v3 = vld [vmem:[%s3319_s3 + $0x10] sm:$0xff]  }
 0x1ec   :  { %2224 = vmatprep.mubr.msk.bf16.mxu1 %vm2628_vm0, %v2627_v1  ;;  %2209 = vmatpush3.bf16.msra.mxu1 %v2539_v8 }
 0x1ed   :  { %2210 = vmatprep.subr.bf16.mxu1 %v2627_v1 }
 0x1f0   :  { %2211 = vmatpush3.bf16.msra.mxu1 %v2540_v9 }
 0x1f1   :  { %2212 = vmatprep.subr.bf16.mxu1 %v2627_v1 }
 0x1f4   :  { %2213 = vmatpush3.bf16.msra.mxu1 %v2541_v10 }
 0x1f5   :  { %2214 = vmatprep.subr.bf16.mxu1 %v2627_v1 }
 0x1f8   :  { %2215 = vmatpush3.bf16.msra.mxu1 %v2542_v11 }
 0x1f9   :  { %2216 = vmatprep.subr.bf16.mxu1 %v2627_v1 }
 0x1fc   :  { %2217 = vmatpush3.bf16.msra.mxu1 %v2543_v20 }
 0x1fd   :  { %2218 = vmatprep.subr.bf16.mxu1 %v2627_v1 }
 0x200   :  { %2219 = vmatpush3.bf16.msra.mxu1 %v2544_v22  ;;  %v2575_v22 = vld [vmem:[%s3319_s3 + $0x20] sm:$0xff]  }
 0x201   :  { %2220 = vmatprep.subr.bf16.mxu1 %v2627_v1 }
 0x204   :  { %2221 = vmatpush3.bf16.msra.mxu1 %v2545_v23  ;;  %v2576_v23 = vld [vmem:[%s3319_s3 + $0x28] sm:$0xff]  }
 0x205   :  { %2222 = vmatprep.subr.bf16.mxu1 %v2627_v1 }
 0x208   :  { %2223 = vmatpush3.bf16.msra.mxu1 %v2546_v24  ;;  %v2578_v24 = vld [vmem:[%s3319_s3 + $0x38] sm:$0xff]  }
 0x209   :  { %2248 = vmatprep.subr.bf16.mxu1 %v2627_v1 }
 0x2be   :  { %v522_v13 = vpop.f32.mrb[4].mxu1 }
 0x2bf   :  { %v528_v14 = vadd.f32 %v522_v13, %v173_v12  ;;  %v2186_v15 = vpop.f32.mrb[5].mxu1  ;;  %v2564_v13 = vld [vmem:[%s3322_s2 + $0x8] sm:$0xff]  }
 0x2c0   :  { %v525_v16 = vpop.f32.mrb[6].mxu1  ;;  %v2566_v15 = vld [vmem:[%s3322_s2 + $0x18] sm:$0xff]  }
 0x2c1   :  { %2599 = vtanh.f32 %v528_v14  ;;  %v2187_v17 = vpop.f32.mrb[7].mxu1  ;;  %v1923_v14 = vpack.c.bf16 %v2852_v2, %v2805_v45  ;;  %v2567_v45 = vld [vmem:[%s3322_s2 + $0x20] sm:$0xff]   ;;  %v2568_v2 = vld [vmem:[%s3322_s2 + $0x28] sm:$0xff]   ;;  %v2569_v16 = vld [vmem:[%s3322_s2 + $0x30] sm:$0xff]  }
 0x2c2   :  { %v2570_v17 = vld [vmem:[%s3322_s2 + $0x38] sm:$0xff]  }
 0x2cb   :  { %v2892_v18 = vpop.eup %2599 }
 0x2cc   :  { %v533_v19 = vpack.c.bf16 %v2892_v18, %v2892_v18 }
 0x2ce   :  { %2205 = vmatmul.mubr.bf16.vlgmr.msra.gmra.mrb[12].mxu0 %v533_v19 }
 0x2cf   :  { %2244 = vmatprep.mubr.msk.bf16.mxu0 %vm2628_vm0, %v2627_v1  ;;  %2229 = vmatpush3.bf16.msra.mxu0 %v2547_v25  ;;  %v3060_v25 = vld [vmem:[%s3319_s3 + $0x40] sm:$0xff]  }
 0x2d0   :  { %2230 = vmatprep.subr.bf16.mxu0 %v2627_v1 }
 0x2d3   :  { %2231 = vmatpush3.bf16.msra.mxu0 %v2548_v26  ;;  %v3067_v26 = vld [vmem:[%s3319_s3 + $0x48] sm:$0xff]  }
 0x2d4   :  { %2232 = vmatprep.subr.bf16.mxu0 %v2627_v1 }
 0x2d7   :  { %2233 = vmatpush3.bf16.msra.mxu0 %v2549_v27  ;;  %v3074_v27 = vld [vmem:[%s3319_s3 + $0x50] sm:$0xff]  }
 0x2d8   :  { %2234 = vmatprep.subr.bf16.mxu0 %v2627_v1 }
 0x2db   :  { %2235 = vmatpush3.bf16.msra.mxu0 %v2550_v28  ;;  %v3081_v28 = vld [vmem:[%s3319_s3 + $0x58] sm:$0xff]  }
 0x2dc   :  { %2236 = vmatprep.subr.bf16.mxu0 %v2627_v1 }
 0x2df   :  { %2237 = vmatpush3.bf16.msra.mxu0 %v2551_v38 }
 0x2e0   :  { %2238 = vmatprep.subr.bf16.mxu0 %v2627_v1 }
 0x2e3   :  { %2239 = vmatpush3.bf16.msra.mxu0 %v2552_v39 }
 0x2e4   :  { %2240 = vmatprep.subr.bf16.mxu0 %v2627_v1 }
 0x2e7   :  { %2241 = vmatpush3.bf16.msra.mxu0 %v2553_v40 }
 0x2e8   :  { %2242 = vmatprep.subr.bf16.mxu0 %v2627_v1 }
 0x2eb   :  { %2243 = vmatpush3.bf16.msra.mxu0 %v2554_v41 }
 0x2ec   :  { %2268 = vmatprep.subr.bf16.mxu0 %v2627_v1 }
 0x3a1   :  { %v632_v30 = vpop.f32.mrb[12].mxu0 }
 0x3a2   :  { %v638_v31 = vadd.f32 %v632_v30, %v176_v29  ;;  %v2206_v32 = vpop.f32.mrb[13].mxu0  ;;  %v3088_v29 = vld [vmem:[%s3319_s3 + $0x60] sm:$0xff]   ;;  %v3095_v30 = vld [vmem:[%s3319_s3 + $0x68] sm:$0xff]  }
 0x3a3   :  { %v635_v33 = vpop.f32.mrb[14].mxu0  ;;  %v3109_v32 = vld [vmem:[%s3319_s3 + $0x78] sm:$0xff]  }
 0x3a4   :  { %2601 = vtanh.f32 %v638_v31  ;;  %v2207_v35 = vpop.f32.mrb[15].mxu0  ;;  %v3102_v31 = vld [vmem:[%s3319_s3 + $0x70] sm:$0xff]   ;;  %v189_v33 = vadd.f32 %v2811_v47, %v2798_v34 }
 0x3ae   :  { %v2932_v36 = vpop.eup %2601 }
 0x3af   :  { %v643_v37 = vpack.c.bf16 %v2932_v36, %v2932_v36  ;;  %v1924_v19 = vpack.c.bf16 %v2932_v36, %v2892_v18  ;;  %v2577_v18 = vld [vmem:[%s3319_s3 + $0x30] sm:$0xff]  }
 0x3b1   :  { %2225 = vmatmul.mubr.bf16.vlgmr.msra.gmra.mrb[8].mxu1 %v643_v37 }
 0x3b2   :  { %2264 = vmatprep.mubr.msk.bf16.mxu1 %vm2628_vm0, %v2627_v1  ;;  %2249 = vmatpush3.bf16.msra.mxu1 %v2555_v42 }
 0x3b3   :  { %2250 = vmatprep.subr.bf16.mxu1 %v2627_v1 }
 0x3b6   :  { %2251 = vmatpush3.bf16.msra.mxu1 %v2556_v43 }
 0x3b7   :  { %2252 = vmatprep.subr.bf16.mxu1 %v2627_v1 }
 0x3ba   :  { %2253 = vmatpush3.bf16.msra.mxu1 %v2557_v44 }
 0x3bb   :  { %2254 = vmatprep.subr.bf16.mxu1 %v2627_v1 }
 0x3be   :  { %2255 = vmatpush3.bf16.msra.mxu1 %v2558_v46 }
 0x3bf   :  { %2256 = vmatprep.subr.bf16.mxu1 %v2627_v1 }
 0x3c2   :  { %2257 = vmatpush3.bf16.msra.mxu1 %v2559_v59 }
 0x3c3   :  { %2258 = vmatprep.subr.bf16.mxu1 %v2627_v1 }
 0x3c6   :  { %2259 = vmatpush3.bf16.msra.mxu1 %v2560_v48 }
 0x3c7   :  { %2260 = vmatprep.subr.bf16.mxu1 %v2627_v1 }
 0x3ca   :  { %2261 = vmatpush3.bf16.msra.mxu1 %v2561_v60 }
 0x3cb   :  { %2262 = vmatprep.subr.bf16.mxu1 %v2627_v1 }
 0x3ce   :  { %2263 = vmatpush3.bf16.msra.mxu1 %v2562_v61 }
 0x3cf   :  { %2288 = vmatprep.subr.bf16.mxu1 %v2563_v62 }
 0x484   :  { %v742_v52 = vpop.f32.mrb[8].mxu1 }
 0x485   :  { %v748_v53 = vadd.f32 %v742_v52, %v181_v51  ;;  %v2226_v54 = vpop.f32.mrb[9].mxu1 }
 0x486   :  { %v745_v55 = vpop.f32.mrb[10].mxu1 }
 0x487   :  { %2603 = vtanh.f32 %v748_v53  ;;  %v2227_v56 = vpop.f32.mrb[11].mxu1 }
 0x491   :  { %v2972_v57 = vpop.eup %2603 }
 0x492   :  { %v753_v58 = vpack.c.bf16 %v2972_v57, %v2972_v57 }
 0x494   :  { %2245 = vmatmul.mubr.bf16.vlgmr.msra.gmra.mrb[16].mxu0 %v753_v58 }
 0x495   :  { %2284 = vmatprep.mubr.msk.bf16.mxu0 %vm2628_vm0, %v2627_v1  ;;  %2269 = vmatpush3.bf16.msra.mxu0 %v2571_v63 }
 0x496   :  { %2270 = vmatprep.subr.bf16.mxu0 %v2627_v1 }
 0x499   :  { %2271 = vmatpush3.bf16.msra.mxu0 %v2572_v0 }
 0x49a   :  { %2272 = vmatprep.subr.bf16.mxu0 %v2627_v1 }
 0x49d   :  { %2273 = vmatpush3.bf16.msra.mxu0 %v2573_v3 }
 0x49e   :  { %2274 = vmatprep.subr.bf16.mxu0 %v2627_v1 }
 0x4a1   :  { %2275 = vmatpush3.bf16.msra.mxu0 %v2574_v4 }
 0x4a2   :  { %2276 = vmatprep.subr.bf16.mxu0 %v2627_v1 }
 0x4a5   :  { %2277 = vmatpush3.bf16.msra.mxu0 %v2575_v22 }
 0x4a6   :  { %2278 = vmatprep.subr.bf16.mxu0 %v2627_v1 }
 0x4a9   :  { %2279 = vmatpush3.bf16.msra.mxu0 %v2576_v23 }
 0x4aa   :  { %2280 = vmatprep.subr.bf16.mxu0 %v2627_v1 }
 0x4ad   :  { %2281 = vmatpush3.bf16.msra.mxu0 %v2577_v18 }
 0x4ae   :  { %2282 = vmatprep.subr.bf16.mxu0 %v2627_v1 }
 0x4b1   :  { %2283 = vmatpush3.bf16.msra.mxu0 %v2578_v24 }
 0x4b2   :  { %2312 = vmatprep.subr.bf16.mxu0 %v2627_v1 }
 0x567   :  { %v852_v6 = vpop.f32.mrb[16].mxu0 }
 0x568   :  { %v858_v7 = vadd.f32 %v852_v6, %v184_v5  ;;  %v2246_v8 = vpop.f32.mrb[17].mxu0 }
 0x569   :  { %v855_v9 = vpop.f32.mrb[18].mxu0 }
 0x56a   :  { %2605 = vtanh.f32 %v858_v7  ;;  %v2247_v10 = vpop.f32.mrb[19].mxu0 }
 0x574   :  { %v2606_v11 = vpop.eup %2605 }
 0x575   :  { %v863_v12 = vpack.c.bf16 %v2606_v11, %v2606_v11  ;;  %v1925_v20 = vpack.c.bf16 %v2606_v11, %v2972_v57  ;;  %v3165_v57 = vld [vmem:[%s3321_s4 + $0x1] ss:$0 sm:$0xff] }
 0x577   :  { %2265 = vmatmul.mubr.bf16.vlgmr.msra.gmra.mrb[12].mxu1 %v863_v12 }
 0x578   :  { %2289 = vmatpush3.bf16.msra.mxu1 %v2563_v62  ;;  %2304 = vmatprep.mubr.bf16.mxu1 %v1923_v14 }
 0x579   :  { %2290 = vmatprep.subr.bf16.mxu1 %v2564_v13 }
 0x57c   :  { %2291 = vmatpush3.bf16.msra.mxu1 %v2564_v13 }
 0x57d   :  { %2292 = vmatprep.subr.bf16.mxu1 %v2565_v50 }
 0x580   :  { %2293 = vmatpush3.bf16.msra.mxu1 %v2565_v50 }
 0x581   :  { %2294 = vmatprep.subr.bf16.mxu1 %v2566_v15 }
 0x584   :  { %2295 = vmatpush3.bf16.msra.mxu1 %v2566_v15 }
 0x585   :  { %2296 = vmatprep.subr.bf16.mxu1 %v2567_v45 }
 0x588   :  { %2297 = vmatpush3.bf16.msra.mxu1 %v2567_v45 }
 0x589   :  { %2298 = vmatprep.subr.bf16.mxu1 %v2568_v2 }
 0x58c   :  { %2299 = vmatpush3.bf16.msra.mxu1 %v2568_v2 }
 0x58d   :  { %2300 = vmatprep.subr.bf16.mxu1 %v2569_v16 }
 0x590   :  { %2301 = vmatpush3.bf16.msra.mxu1 %v2569_v16 }
 0x591   :  { %2302 = vmatprep.subr.bf16.mxu1 %v2570_v17 }
 0x594   :  { %2303 = vmatpush3.bf16.msra.mxu1 %v2570_v17 }
 0x595   :  { %2332 = vmatprep.subr.bf16.mxu1 %v2627_v1 }
 0x597   :  { %2305 = vmatmul.mubr.bf16.vlgmr.msra.gmra.mrb[16].mxu1 %v1924_v19 }
 0x598   :  { %2308 = vmatprep.mubr.bf16.mxu1 %v1925_v20  ;;  %2333 = vmatpush3.bf16.msra.mxu1 %v3060_v25 }
 0x599   :  { %2334 = vmatprep.subr.bf16.mxu1 %v2627_v1 }
 0x59c   :  { %2335 = vmatpush3.bf16.msra.mxu1 %v3067_v26 }
 0x59d   :  { %2336 = vmatprep.subr.bf16.mxu1 %v2627_v1 }
 0x5a0   :  { %2337 = vmatpush3.bf16.msra.mxu1 %v3074_v27 }
 0x5a1   :  { %2338 = vmatprep.subr.bf16.mxu1 %v2627_v1 }
 0x5a4   :  { %2339 = vmatpush3.bf16.msra.mxu1 %v3081_v28 }
 0x5a5   :  { %2340 = vmatprep.subr.bf16.mxu1 %v2627_v1 }
 0x5a8   :  { %2341 = vmatpush3.bf16.msra.mxu1 %v3088_v29 }
 0x5a9   :  { %2342 = vmatprep.subr.bf16.mxu1 %v2627_v1 }
 0x5ac   :  { %2343 = vmatpush3.bf16.msra.mxu1 %v3095_v30 }
 0x5ad   :  { %2344 = vmatprep.subr.bf16.mxu1 %v2627_v1 }
 0x5b0   :  { %2345 = vmatpush3.bf16.msra.mxu1 %v3102_v31 }
 0x5b1   :  { %2346 = vmatprep.subr.bf16.mxu1 %v2627_v1 }
 0x5b4   :  { %2347 = vmatpush3.bf16.msra.mxu1 %v3109_v32 }
 0x5b5   :  { %2372 = vmatprep.subr.bf16.mxu1 %v2627_v1 }
 0x64a   :  { %v962_v35 = vpop.f32.mrb[12].mxu1 }
 0x64b   :  { %v968_v36 = vadd.f32 %v962_v35, %v189_v33  ;;  %v2266_v37 = vpop.f32.mrb[13].mxu1 }
 0x64c   :  { %v965_v38 = vpop.f32.mrb[14].mxu1 }
 0x64d   :  { %2607 = vtanh.f32 %v968_v36  ;;  %v2267_v39 = vpop.f32.mrb[15].mxu1 }
 0x657   :  { %v2608_v40 = vpop.eup %2607 }
 0x658   :  { %v973_v41 = vpack.c.bf16 %v2608_v40, %v2608_v40 }
 0x65a   :  { %2285 = vmatmul.mubr.bf16.vlgmr.msra.gmra.mrb[20].mxu0 %v973_v41 }
 0x65b   :  { %2313 = vmatpush3.bf16.msra.mxu0 %v3060_v25  ;;  %2328 = vmatprep.mubr.msk.bf16.mxu0 %vm2628_vm0, %v2627_v1 }
 0x65c   :  { %2314 = vmatprep.subr.bf16.mxu0 %v2627_v1 }
 0x65f   :  { %2315 = vmatpush3.bf16.msra.mxu0 %v3067_v26 }
 0x660   :  { %2316 = vmatprep.subr.bf16.mxu0 %v2627_v1 }
 0x663   :  { %2317 = vmatpush3.bf16.msra.mxu0 %v3074_v27 }
 0x664   :  { %2318 = vmatprep.subr.bf16.mxu0 %v2627_v1 }
 0x667   :  { %2319 = vmatpush3.bf16.msra.mxu0 %v3081_v28 }
 0x668   :  { %2320 = vmatprep.subr.bf16.mxu0 %v2627_v1 }
 0x66a   :  { %v3125_v47 = vpop.f32.mrb[16].mxu1 }
 0x66b   :  { %v1227_v42 = vpop.f32.mrb[17].mxu1  ;;  %2321 = vmatpush3.bf16.msra.mxu0 %v3088_v29  ;;  %v1236_v13 = vadd.f32 %v3125_v47, %v3165_v57 }
 0x66c   :  { %v3128_v43 = vpop.f32.mrb[18].mxu1  ;;  %2322 = vmatprep.subr.bf16.mxu0 %v2627_v1  ;;  %v1228_v58 = vadd.f32 %v3165_v57, %v1227_v42 }
 0x66d   :  { %v3131_v44 = vpop.f32.mrb[19].mxu1  ;;  %v1239_v19 = vadd.f32 %v3128_v43, %v3165_v57 }
 0x66e   :  { %v1231_v5 = vadd.f32 %v3165_v57, %v3131_v44 }
 0x66f   :  { %2323 = vmatpush3.bf16.msra.mxu0 %v3095_v30 }
 0x670   :  { %2324 = vmatprep.subr.bf16.mxu0 %v2627_v1 }
 0x673   :  { %2325 = vmatpush3.bf16.msra.mxu0 %v3102_v31 }
 0x674   :  { %2326 = vmatprep.subr.bf16.mxu0 %v2627_v1 }
 0x677   :  { %2327 = vmatpush3.bf16.msra.mxu0 %v3109_v32 }
 0x678   :  { %2352 = vmatprep.subr.bf16.mxu0 %v2627_v1 }
 0x67a   :  { %2329 = vmatmul.mubr.bf16.vlgmr.msra.gmra.mrb[24].mxu0 %v2629_v21  ;;  %v192_v21 = vadd.f32 %v2815_v49, %v2798_v34 }
 0x67b   :  { %2353 = vmatpush3.bf16.msra.mxu0 %v3060_v25  ;;  %2368 = vmatprep.mubr.msk.bf16.mxu0 %vm2628_vm0, %v2627_v1 }
 0x67c   :  { %2354 = vmatprep.subr.bf16.mxu0 %v2627_v1 }
 0x67f   :  { %2355 = vmatpush3.bf16.msra.mxu0 %v3067_v26 }
 0x680   :  { %2356 = vmatprep.subr.bf16.mxu0 %v2627_v1 }
 0x683   :  { %2357 = vmatpush3.bf16.msra.mxu0 %v3074_v27 }
 0x684   :  { %2358 = vmatprep.subr.bf16.mxu0 %v2627_v1 }
 0x687   :  { %2359 = vmatpush3.bf16.msra.mxu0 %v3081_v28 }
 0x688   :  { %2360 = vmatprep.subr.bf16.mxu0 %v2627_v1 }
 0x68b   :  { %2361 = vmatpush3.bf16.msra.mxu0 %v3088_v29 }
 0x68c   :  { %2362 = vmatprep.subr.bf16.mxu0 %v2627_v1 }
 0x68f   :  { %2363 = vmatpush3.bf16.msra.mxu0 %v3095_v30 }
 0x690   :  { %2364 = vmatprep.subr.bf16.mxu0 %v2627_v1 }
 0x693   :  { %2365 = vmatpush3.bf16.msra.mxu0 %v3102_v31 }
 0x694   :  { %2366 = vmatprep.subr.bf16.mxu0 %v2627_v1 }
 0x697   :  { %2367 = vmatpush3.bf16.msra.mxu0 %v3109_v32 }
 0x698   :  { %2392 = vmatprep.subr.bf16.mxu0 %v2627_v1 }
 0x72d   :  { %v1072_v46 = vpop.f32.mrb[20].mxu0 }
 0x72e   :  { %v1078_v51 = vadd.f32 %v1072_v46, %v192_v21  ;;  %v2286_v52 = vpop.f32.mrb[21].mxu0  ;;  %v2590_v46 = vld [vmem:[%s3323_s5 + $0x18] sm:$0xff]  }
 0x72f   :  { %v1075_v53 = vpop.f32.mrb[22].mxu0 }
 0x730   :  { %2609 = vtanh.f32 %v1078_v51  ;;  %v2287_v54 = vpop.f32.mrb[23].mxu0 }
 0x73a   :  { %v2610_v55 = vpop.eup %2609 }
 0x73b   :  { %v1926_v56 = vpack.c.bf16 %v2610_v55, %v2608_v40 }
 0x73d   :  { %2309 = vmatmul.mubr.bf16.gmra.mrb[20].mxu1 %v1926_v56 }
 0x73e   :  { %2348 = vmatprep.mubr.msk.bf16.mxu1 %vm2628_vm0, %v2627_v1 }
 0x74d   :  { %v1366_v34 = vpop.f32.mrb[24].mxu0 }
 0x74e   :  { %v1372_v49 = vadd.f32 %v1366_v34, %v1228_v58  ;;  %v2330_v59 = vpop.f32.mrb[25].mxu0 }
 0x74f   :  { %v1369_v48 = vpop.f32.mrb[26].mxu0  ;;  %v2592_v59 = vld [vmem:[%s3323_s5 + $0x28] sm:$0xff]  }
 0x750   :  { %2611 = vtanh.f32 %v1372_v49  ;;  %v2331_v60 = vpop.f32.mrb[27].mxu0  ;;  %v2591_v49 = vld [vmem:[%s3323_s5 + $0x20] sm:$0xff]   ;;  %v2593_v48 = vld [vmem:[%s3323_s5 + $0x30] sm:$0xff]  }
 0x751   :  { %v2594_v60 = vld [vmem:[%s3323_s5 + $0x38] sm:$0xff]  }
 0x75a   :  { %v2612_v61 = vpop.eup %2611 }
 0x75b   :  { %v1375_v62 = vpack.c.bf16 %v2612_v61, %v2612_v61 }
 0x75d   :  { %2349 = vmatmul.mubr.bf16.vlgmr.msra.gmra.mrb[24].mxu1 %v1375_v62 }
 0x75e   :  { %2373 = vmatpush3.bf16.msra.mxu1 %v3060_v25  ;;  %2388 = vmatprep.mubr.msk.bf16.mxu1 %vm2628_vm0, %v2627_v1 }
 0x75f   :  { %2374 = vmatprep.subr.bf16.mxu1 %v2627_v1 }
 0x762   :  { %2375 = vmatpush3.bf16.msra.mxu1 %v3067_v26 }
 0x763   :  { %2376 = vmatprep.subr.bf16.mxu1 %v2627_v1 }
 0x766   :  { %2377 = vmatpush3.bf16.msra.mxu1 %v3074_v27 }
 0x767   :  { %2378 = vmatprep.subr.bf16.mxu1 %v2627_v1 }
 0x76a   :  { %2379 = vmatpush3.bf16.msra.mxu1 %v3081_v28 }
 0x76b   :  { %2380 = vmatprep.subr.bf16.mxu1 %v2627_v1 }
 0x76e   :  { %2381 = vmatpush3.bf16.msra.mxu1 %v3088_v29 }
 0x76f   :  { %2382 = vmatprep.subr.bf16.mxu1 %v2627_v1 }
 0x772   :  { %2383 = vmatpush3.bf16.msra.mxu1 %v3095_v30 }
 0x773   :  { %2384 = vmatprep.subr.bf16.mxu1 %v2627_v1 }
 0x776   :  { %2385 = vmatpush3.bf16.msra.mxu1 %v3102_v31 }
 0x777   :  { %2386 = vmatprep.subr.bf16.mxu1 %v2627_v1 }
 0x77a   :  { %2387 = vmatpush3.bf16.msra.mxu1 %v3109_v32 }
 0x77b   :  { %2412 = vmatprep.subr.bf16.mxu1 %v2627_v1 }
 0x810   :  { %v3186_v63 = vpop.f32.mrb[20].mxu1 }
 0x811   :  { %v3188_v0 = vpop.f32.mrb[21].mxu1  ;;  %v1252_v51 = vadd.f32 %v3186_v63, %v3165_v57 }
 0x812   :  { %v3190_v3 = vpop.f32.mrb[22].mxu1  ;;  %v1244_v36 = vadd.f32 %v3165_v57, %v3188_v0 }
 0x813   :  { %v3192_v4 = vpop.f32.mrb[23].mxu1  ;;  %v1255_v61 = vadd.f32 %v3190_v3, %v3165_v57 }
 0x830   :  { %v1410_v6 = vpop.f32.mrb[24].mxu1 }
 0x831   :  { %v1416_v7 = vadd.f32 %v1410_v6, %v1231_v5  ;;  %v2350_v8 = vpop.f32.mrb[25].mxu1 }
 0x832   :  { %v1413_v9 = vpop.f32.mrb[26].mxu1 }
 0x833   :  { %2613 = vtanh.f32 %v1416_v7  ;;  %v2351_v10 = vpop.f32.mrb[27].mxu1 }
 0x83d   :  { %v2614_v11 = vpop.eup %2613 }
 0x83e   :  { %v1419_v12 = vpack.c.bf16 %v2614_v11, %v2614_v11 }
 0x840   :  { %2369 = vmatmul.mubr.bf16.vlgmr.msra.gmra.mrb[28].mxu0 %v1419_v12 }
 0x841   :  { %2393 = vmatpush3.bf16.msra.mxu0 %v3060_v25  ;;  %2408 = vmatprep.mubr.msk.bf16.mxu0 %vm2628_vm0, %v2627_v1 }
 0x842   :  { %2394 = vmatprep.subr.bf16.mxu0 %v2627_v1 }
 0x845   :  { %2395 = vmatpush3.bf16.msra.mxu0 %v3067_v26 }
 0x846   :  { %2396 = vmatprep.subr.bf16.mxu0 %v2627_v1 }
 0x849   :  { %2397 = vmatpush3.bf16.msra.mxu0 %v3074_v27 }
 0x84a   :  { %2398 = vmatprep.subr.bf16.mxu0 %v2627_v1 }
 0x84d   :  { %2399 = vmatpush3.bf16.msra.mxu0 %v3081_v28 }
 0x84e   :  { %2400 = vmatprep.subr.bf16.mxu0 %v2627_v1 }
 0x851   :  { %2401 = vmatpush3.bf16.msra.mxu0 %v3088_v29 }
 0x852   :  { %2402 = vmatprep.subr.bf16.mxu0 %v2627_v1 }
 0x855   :  { %2403 = vmatpush3.bf16.msra.mxu0 %v3095_v30 }
 0x856   :  { %2404 = vmatprep.subr.bf16.mxu0 %v2627_v1 }
 0x859   :  { %2405 = vmatpush3.bf16.msra.mxu0 %v3102_v31 }
 0x85a   :  { %2406 = vmatprep.subr.bf16.mxu0 %v2627_v1 }
 0x85d   :  { %2407 = vmatpush3.bf16.msra.mxu0 %v3109_v32 }
 0x85e   :  { %2432 = vmatprep.subr.bf16.mxu0 %v2627_v1 }
 0x913   :  { %v1454_v14 = vpop.f32.mrb[28].mxu0 }
 0x914   :  { %v1460_v50 = vadd.f32 %v1454_v14, %v1236_v13  ;;  %v2370_v15 = vpop.f32.mrb[29].mxu0 }
 0x915   :  { %v1457_v45 = vpop.f32.mrb[30].mxu0 }
 0x916   :  { %2615 = vtanh.f32 %v1460_v50  ;;  %v2371_v2 = vpop.f32.mrb[31].mxu0 }
 0x920   :  { %v2616_v16 = vpop.eup %2615 }
 0x921   :  { %v1463_v17 = vpack.c.bf16 %v2616_v16, %v2616_v16 }
 0x923   :  { %2389 = vmatmul.mubr.bf16.vlgmr.msra.gmra.mrb[28].mxu1 %v1463_v17 }
 0x924   :  { %2413 = vmatpush3.bf16.msra.mxu1 %v3060_v25  ;;  %2428 = vmatprep.mubr.msk.bf16.mxu1 %vm2628_vm0, %v2627_v1 }
 0x925   :  { %2414 = vmatprep.subr.bf16.mxu1 %v2627_v1 }
 0x928   :  { %2415 = vmatpush3.bf16.msra.mxu1 %v3067_v26 }
 0x929   :  { %2416 = vmatprep.subr.bf16.mxu1 %v2627_v1 }
 0x92c   :  { %2417 = vmatpush3.bf16.msra.mxu1 %v3074_v27 }
 0x92d   :  { %2418 = vmatprep.subr.bf16.mxu1 %v2627_v1 }
 0x930   :  { %2419 = vmatpush3.bf16.msra.mxu1 %v3081_v28 }
 0x931   :  { %2420 = vmatprep.subr.bf16.mxu1 %v2627_v1 }
 0x934   :  { %2421 = vmatpush3.bf16.msra.mxu1 %v3088_v29 }
 0x935   :  { %2422 = vmatprep.subr.bf16.mxu1 %v2627_v1 }
 0x938   :  { %2423 = vmatpush3.bf16.msra.mxu1 %v3095_v30 }
 0x939   :  { %2424 = vmatprep.subr.bf16.mxu1 %v2627_v1 }
 0x93c   :  { %2425 = vmatpush3.bf16.msra.mxu1 %v3102_v31 }
 0x93d   :  { %2426 = vmatprep.subr.bf16.mxu1 %v2627_v1 }
 0x940   :  { %2427 = vmatpush3.bf16.msra.mxu1 %v3109_v32 }
 0x941   :  { %2452 = vmatprep.subr.bf16.mxu1 %v2627_v1 }
 0x9f6   :  { %v1498_v20 = vpop.f32.mrb[28].mxu1 }
 0x9f7   :  { %v1504_v22 = vadd.f32 %v1498_v20, %v1239_v19  ;;  %v2390_v23 = vpop.f32.mrb[29].mxu1 }
 0x9f8   :  { %v1501_v18 = vpop.f32.mrb[30].mxu1 }
 0x9f9   :  { %2617 = vtanh.f32 %v1504_v22  ;;  %v2391_v24 = vpop.f32.mrb[31].mxu1 }
 0xa03   :  { %v2618_v33 = vpop.eup %2617 }
 0xa04   :  { %v1507_v35 = vpack.c.bf16 %v2618_v33, %v2618_v33 }
 0xa06   :  { %2409 = vmatmul.mubr.bf16.vlgmr.msra.gmra.mrb[32].mxu0 %v1507_v35 }
 0xa07   :  { %2433 = vmatpush3.bf16.msra.mxu0 %v3060_v25  ;;  %2448 = vmatprep.mubr.msk.bf16.mxu0 %vm2628_vm0, %v2627_v1 }
 0xa08   :  { %2434 = vmatprep.subr.bf16.mxu0 %v2627_v1 }
 0xa0b   :  { %2435 = vmatpush3.bf16.msra.mxu0 %v3067_v26 }
 0xa0c   :  { %2436 = vmatprep.subr.bf16.mxu0 %v2627_v1 }
 0xa0f   :  { %2437 = vmatpush3.bf16.msra.mxu0 %v3074_v27 }
 0xa10   :  { %2438 = vmatprep.subr.bf16.mxu0 %v2627_v1 }
 0xa13   :  { %2439 = vmatpush3.bf16.msra.mxu0 %v3081_v28 }
 0xa14   :  { %2440 = vmatprep.subr.bf16.mxu0 %v2627_v1 }
 0xa17   :  { %2441 = vmatpush3.bf16.msra.mxu0 %v3088_v29 }
 0xa18   :  { %2442 = vmatprep.subr.bf16.mxu0 %v2627_v1 }
 0xa1b   :  { %2443 = vmatpush3.bf16.msra.mxu0 %v3095_v30 }
 0xa1c   :  { %2444 = vmatprep.subr.bf16.mxu0 %v2627_v1 }
 0xa1f   :  { %2445 = vmatpush3.bf16.msra.mxu0 %v3102_v31 }
 0xa20   :  { %2446 = vmatprep.subr.bf16.mxu0 %v2627_v1 }
 0xa23   :  { %2447 = vmatpush3.bf16.msra.mxu0 %v3109_v32 }
 0xa24   :  { %2472 = vmatprep.subr.bf16.mxu0 %v2627_v1 }
 0xad9   :  { %v1542_v37 = vpop.f32.mrb[32].mxu0 }
 0xada   :  { %v1548_v38 = vadd.f32 %v1542_v37, %v1244_v36  ;;  %v2410_v39 = vpop.f32.mrb[33].mxu0 }
 0xadb   :  { %v1545_v40 = vpop.f32.mrb[34].mxu0 }
 0xadc   :  { %2619 = vtanh.f32 %v1548_v38  ;;  %v2411_v41 = vpop.f32.mrb[35].mxu0 }
 0xae6   :  { %v2620_v47 = vpop.eup %2619 }
 0xae7   :  { %v1551_v42 = vpack.c.bf16 %v2620_v47, %v2620_v47 }
 0xae9   :  { %2429 = vmatmul.mubr.bf16.vlgmr.msra.gmra.mrb[32].mxu1 %v1551_v42 }
 0xaea   :  { %2453 = vmatpush3.bf16.msra.mxu1 %v3060_v25  ;;  %2468 = vmatprep.mubr.msk.bf16.mxu1 %vm2628_vm0, %v2627_v1  ;;  %v1247_v25 = vadd.f32 %v3165_v57, %v3192_v4 }
 0xaeb   :  { %2454 = vmatprep.subr.bf16.mxu1 %v2627_v1 }
 0xaee   :  { %2455 = vmatpush3.bf16.msra.mxu1 %v3067_v26 }
 0xaef   :  { %2456 = vmatprep.subr.bf16.mxu1 %v2627_v1 }
 0xaf2   :  { %2457 = vmatpush3.bf16.msra.mxu1 %v3074_v27 }
 0xaf3   :  { %2458 = vmatprep.subr.bf16.mxu1 %v2627_v1 }
 0xaf6   :  { %2459 = vmatpush3.bf16.msra.mxu1 %v3081_v28 }
 0xaf7   :  { %2460 = vmatprep.subr.bf16.mxu1 %v2627_v1 }
 0xafa   :  { %2461 = vmatpush3.bf16.msra.mxu1 %v3088_v29 }
 0xafb   :  { %2462 = vmatprep.subr.bf16.mxu1 %v2627_v1 }
 0xafe   :  { %2463 = vmatpush3.bf16.msra.mxu1 %v3095_v30  ;;  %v2587_v30 = vld [vmem:[%s3323_s5] sm:$0xff]  }
 0xaff   :  { %2464 = vmatprep.subr.bf16.mxu1 %v2627_v1 }
 0xb02   :  { %2465 = vmatpush3.bf16.msra.mxu1 %v3102_v31  ;;  %v2588_v31 = vld [vmem:[%s3323_s5 + $0x8] sm:$0xff]  }
 0xb03   :  { %2466 = vmatprep.subr.bf16.mxu1 %v2627_v1 }
 0xb06   :  { %2467 = vmatpush3.bf16.msra.mxu1 %v3109_v32  ;;  %v2589_v32 = vld [vmem:[%s3323_s5 + $0x10] sm:$0xff]  }
 0xbbc   :  { %v1586_v26 = vpop.f32.mrb[32].mxu1 }
 0xbbd   :  { %v1592_v27 = vadd.f32 %v1586_v26, %v1247_v25  ;;  %v2430_v28 = vpop.f32.mrb[33].mxu1 }
 0xbbe   :  { %v1589_v43 = vpop.f32.mrb[34].mxu1 }
 0xbbf   :  { %2621 = vtanh.f32 %v1592_v27  ;;  %v2431_v29 = vpop.f32.mrb[35].mxu1 }
 0xbc9   :  { %v2622_v44 = vpop.eup %2621 }
 0xbca   :  { %v1595_v21 = vpack.c.bf16 %v2622_v44, %v2622_v44 }
 0xbcc   :  { %2449 = vmatmul.mubr.bf16.vlgmr.msra.gmra.mrb[36].mxu0 %v1595_v21 }
 0xbcd   :  { %2488 = vmatprep.mubr.msk.bf16.mxu0 %vm2628_vm0, %v2627_v1  ;;  %2473 = vmatpush3.bf16.msra.mxu0 %v2587_v30 }
 0xbce   :  { %2474 = vmatprep.subr.bf16.mxu0 %v2627_v1 }
 0xbd1   :  { %2475 = vmatpush3.bf16.msra.mxu0 %v2588_v31 }
 0xbd2   :  { %2476 = vmatprep.subr.bf16.mxu0 %v2627_v1 }
 0xbd5   :  { %2477 = vmatpush3.bf16.msra.mxu0 %v2589_v32 }
 0xbd6   :  { %2478 = vmatprep.subr.bf16.mxu0 %v2627_v1 }
 0xbd9   :  { %2479 = vmatpush3.bf16.msra.mxu0 %v2590_v46 }
 0xbda   :  { %2480 = vmatprep.subr.bf16.mxu0 %v2627_v1 }
 0xbdd   :  { %2481 = vmatpush3.bf16.msra.mxu0 %v2591_v49 }
 0xbde   :  { %2482 = vmatprep.subr.bf16.mxu0 %v2627_v1 }
 0xbe1   :  { %2483 = vmatpush3.bf16.msra.mxu0 %v2592_v59 }
 0xbe2   :  { %2484 = vmatprep.subr.bf16.mxu0 %v2627_v1 }
 0xbe5   :  { %2485 = vmatpush3.bf16.msra.mxu0 %v2593_v48 }
 0xbe6   :  { %2486 = vmatprep.subr.bf16.mxu0 %v2627_v1  ;;  %v1914_v1 = vld [vmem:[%s3324_s6] ss:$0 sm:$0xff] }
 0xbe9   :  { %2487 = vmatpush3.bf16.msra.mxu0 %v2594_v60 }
 0xc9f   :  { %v1630_v52 = vpop.f32.mrb[36].mxu0 }
 0xca0   :  { %v1636_v53 = vadd.f32 %v1630_v52, %v1252_v51  ;;  %v2450_v54 = vpop.f32.mrb[37].mxu0 }
 0xca1   :  { %v1633_v55 = vpop.f32.mrb[38].mxu0 }
 0xca2   :  { %2623 = vtanh.f32 %v1636_v53  ;;  %v2451_v56 = vpop.f32.mrb[39].mxu0 }
 0xcac   :  { %v2624_v58 = vpop.eup %2623 }
 0xcad   :  { %v1639_v34 = vpack.c.bf16 %v2624_v58, %v2624_v58 }
 0xcaf   :  { %2469 = vmatmul.mubr.bf16.vlgmr.msra.gmra.mrb[36].mxu1 %v1639_v34 }
 0xd82   :  { %v1674_v62 = vpop.f32.mrb[36].mxu1 }
 0xd83   :  { %v1680_v63 = vadd.f32 %v1674_v62, %v1255_v61  ;;  %v2470_v0 = vpop.f32.mrb[37].mxu1 }
 0xd84   :  { %v1677_v4 = vpop.f32.mrb[38].mxu1 }
 0xd85   :  { %2625 = vtanh.f32 %v1680_v63  ;;  %v2471_v5 = vpop.f32.mrb[39].mxu1 }
 0xd8f   :  { %v2626_v6 = vpop.eup %2625 }
 0xd90   :  { %v1682_v7 = vpack.c.bf16 %v2626_v6, %v2626_v6 }
 0xd92   :  { %2489 = vmatmul.mubr.bf16.vlgmr.msra.gmra.mrb[40].mxu0 %v1682_v7 }
 0xe65   :  { %v1788_v8 = vpop.f32.mrb[40].mxu0 }
 0xe66   :  { %v1789_v9 = vadd.f32 %v1914_v1, %v1788_v8  ;;  %v2490_v10 = vpop.f32.mrb[41].mxu0 }
 0xe67   :  { %v1791_v11 = vpop.f32.mrb[42].mxu0 }
 0xe68   :  { %1794 = vst [vmem:[%s3325_s7] sm:$0xff] %v1789_v9  ;;  %v2491_v57 = vpop.f32.mrb[43].mxu0 }

</bundles_post_ra>
